<compile_context>
chip_gen: v6e
topology: v6e:2x2x1
jax: 0.10.0
libtpu: 0.0.40
codegen_flags: <defaults>
</compile_context>

<pallas_src>
import functools

import jax
import jax.numpy as jnp
from jax.experimental import pallas as pl
from jax.experimental.pallas import tpu as pltpu

NEG_INF = -1e30

# dtype fed to the MXU: bf16 cuts vmatmul passes ~3x vs f32 and halves the [N,N] tile's
# vreg/VMEM traffic on v5e/v6e/v7x; accumulation stays f32 (preferred_element_type) and
# all softmax/mask math stays f32.  Set to jnp.float32 for exact-parity matmuls.
MXU_DTYPE = jnp.bfloat16


def _round_up(x, m):
    return (x + m - 1) // m * m


# ---------------------------------------------------------------------------
# Fused Pallas kernel: conv1 -> relu -> conv2 -> relu -> conv3 -> pool -> lin
# ---------------------------------------------------------------------------
def fused_gat_kernel(x_ref, mask_ref, slab_ref, out_ref, *,
                     n, f_out, w_rows, wlin_rows, bias_rows, pool_rows):
    def mxu_dot(a, b):
        return jnp.dot(a.astype(MXU_DTYPE), b.astype(MXU_DTYPE),
                       preferred_element_type=jnp.float32)

    # Additive mask (0 for edge incl. self-loop, NEG_INF for non-edge), loaded once, reused 3x.
    mask = mask_ref[...]                                          # [N, N] f32
    bias_blk = slab_ref[bias_rows[0]:bias_rows[1], :]             # [8, slab_cols]

    h = x_ref[...]                                                # [N, F_in]
    for l in range(3):
        r0, r1 = w_rows[l]
        w_ext = slab_ref[r0:r1, :][:, :f_out + 2]                 # [F_prev, F_out+2]
        # One MXU pass yields h, <h,att_src>, <h,att_dst>  (att vectors folded into W_ext).
        hext = mxu_dot(h, w_ext)                                  # [N, F_out+2] f32
        hl = hext[:, :f_out]                                      # [N, F_out]
        a_src = hext[:, f_out:f_out + 1]                          # [N, 1]
        a_dst = hext[:, f_out + 1:f_out + 2]                      # [N, 1]

        # e[i, j] = leaky_relu(a_dst[i] + a_src[j], 0.2)  (i = target, j = source)
        e = a_dst + a_src.T                                       # [N, N]
        e = jnp.maximum(e, 0.2 * e)                               # leaky relu (mul + max)
        e = e + mask                                              # masked logits (f32)

        # Row softmax in f32. Self-loops guarantee the row max comes from a real edge,
        # so masked entries underflow to exactly 0 after exp.
        e_max = jnp.max(e, axis=-1, keepdims=True)
        p = jnp.exp(e - e_max)
        denom = jnp.sum(p, axis=-1, keepdims=True)

        # Normalize AFTER the aggregation matmul (commutes row-wise): VPU multiply is
        # N*F_out instead of N*N, and the MXU consumes p directly.
        out = mxu_dot(p, hl) * pl.reciprocal(denom, approx=True)  # [N, F_out]
        out = out + bias_blk[l:l + 1, :f_out]
        if l < 2:
            out = jnp.maximum(out, 0.0)                           # relu after conv1/conv2
        out_ref[l * n:(l + 1) * n, :] = out
        h = out

    # global_mean_pool (pool matrix zero-padded to 8 rows) + final Linear
    # (lin_w / lin_b zero-padded to F_out cols so the write is full-width).
    pool = slab_ref[pool_rows[0]:pool_rows[1], :][:, :n]          # [8, N]
    pooled = mxu_dot(pool, h)                                     # [8, F_out]
    out_ref[3 * n:3 * n + 8, :] = pooled

    wlin = slab_ref[wlin_rows[0]:wlin_rows[1], :][:, :f_out]      # [F_out, F_out]
    final = mxu_dot(pooled, wlin) + bias_blk[3:4, :f_out]         # [8, F_out]
    out_ref[3 * n + 8:3 * n + 16, :] = final


# ---------------------------------------------------------------------------
# Wrapper
# ---------------------------------------------------------------------------
_VMEM = pl.BlockSpec(memory_space=pltpu.MemorySpace.VMEM)


def fused_gat_forward(x, mask, pool_mat, layer_params, lin_w, lin_b):
    n, f_in = x.shape
    f_out = layer_params[0][0].shape[1]
    g = pool_mat.shape[0]
    c = lin_w.shape[1]

    # Fold attention vectors into the weight matmul: W_ext = [W | W@a_src^T | W@a_dst^T].
    w_ext = [jnp.concatenate([w, w @ a_s.T, w @ a_d.T], axis=1)
             for (w, a_s, a_d, _) in layer_params]
    biases = [b for (_, _, _, b) in layer_params]

    # Pack every parameter + the pool matrix into ONE pre-padded [rows, 128] f32 slab
    # (1 input DMA instead of 9 tiny descriptor-bound ones).  All row offsets are
    # multiples of 8 (sublane aligned); offsets are passed to the kernel as static ints.
    slab_cols = _round_up(max(f_out + 2, f_in, n, 8), 128)
    off = 0

    def _take(rows):
        nonlocal off
        rng = (off, off + rows)
        off = _round_up(off + rows, 8)
        return rng

    w_rows = tuple(_take(w.shape[0]) for w in w_ext)
    wlin_rows = _take(f_out)
    bias_rows = _take(8)     # rows: b1, b2, b3, lin_b (padded), then zeros
    pool_rows = _take(8)     # pool matrix padded to 8 rows
    total_rows = _round_up(off, 8)

    slab = jnp.zeros((total_rows, slab_cols), jnp.float32)
    for (r0, r1), w in zip(w_rows, w_ext):
        slab = slab.at[r0:r1, :f_out + 2].set(w)
    slab = slab.at[wlin_rows[0]:wlin_rows[1], :c].set(lin_w)       # zero-padded to f_out cols
    slab = slab.at[bias_rows[0] + 0, :f_out].set(biases[0][0])
    slab = slab.at[bias_rows[0] + 1, :f_out].set(biases[1][0])
    slab = slab.at[bias_rows[0] + 2, :f_out].set(biases[2][0])
    slab = slab.at[bias_rows[0] + 3, :c].set(lin_b[0])
    slab = slab.at[pool_rows[0]:pool_rows[0] + g, :n].set(pool_mat)

    # Single row-stacked output buffer: [gat1 | gat2 | gat3 | pooled(8) | final(8)].
    out_rows = 3 * n + 16

    # Advisory cost estimate for the fused call.
    flops = 0
    f_prev = f_in
    for _ in range(3):
        flops += 2 * n * f_prev * (f_out + 2)   # h @ W_ext
        flops += 2 * n * n * f_out              # p @ h
        flops += 6 * n * n                      # leaky-relu / softmax elementwise
        f_prev = f_out
    flops += 2 * 8 * n * f_out + 2 * 8 * f_out * f_out   # pool + linear
    bytes_accessed = 4 * (x.size + mask.size + slab.size + out_rows * f_out)
    cost = pl.CostEstimate(flops=int(flops),
                           transcendentals=int(3 * n * n + 3 * n),
                           bytes_accessed=int(bytes_accessed))

    kernel = functools.partial(
        fused_gat_kernel, n=n, f_out=f_out,
        w_rows=w_rows, wlin_rows=wlin_rows, bias_rows=bias_rows, pool_rows=pool_rows)

    out = pl.pallas_call(
        kernel,
        out_shape=jax.ShapeDtypeStruct((out_rows, f_out), jnp.float32),
        in_specs=[_VMEM, _VMEM, _VMEM],
        out_specs=_VMEM,
        cost_estimate=cost,
    )(x, mask, slab)

    gat1 = out[0:n]
    gat2 = out[n:2 * n]
    gat3 = out[2 * n:3 * n]
    pooled = out[3 * n:3 * n + g]
    final = out[3 * n + 8:3 * n + 8 + g, :c]
    return gat1, gat2, gat3, pooled, final


# ---------------------------------------------------------------------------
# Plain-JAX glue
# ---------------------------------------------------------------------------
def build_mask(edge_index, num_nodes):
    """Additive attention mask: 0 where edge dst<-src exists (plus self loops), NEG_INF else."""
    src = edge_index[0].astype(jnp.int32)
    dst = edge_index[1].astype(jnp.int32)
    adj = jnp.zeros((num_nodes, num_nodes), jnp.float32)
    adj = adj.at[dst, src].set(1.0)
    idx = jnp.arange(num_nodes)
    adj = adj.at[idx, idx].set(1.0)
    return jnp.where(adj > 0, 0.0, NEG_INF).astype(jnp.float32)


def build_pool(batch, num_graphs):
    """Mean-pool matrix P[g, i] = 1/|graph g| if batch[i] == g else 0."""
    onehot = (batch[None, :] == jnp.arange(num_graphs)[:, None]).astype(jnp.float32)
    counts = jnp.sum(onehot, axis=1, keepdims=True)
    return onehot / jnp.maximum(counts, 1.0)


def gat_forward(params, x, edge_index, batch, num_graphs):
    n = x.shape[0]
    mask = build_mask(edge_index, n)
    pool_mat = build_pool(batch.astype(jnp.int32), num_graphs)

    gat1, gat2, gat3, pooled, final = fused_gat_forward(
        x, mask, pool_mat,
        [params["conv1"], params["conv2"], params["conv3"]],
        params["lin_w"], params["lin_b"],
    )

    return {
        "gat1": gat1,
        "gat2": gat2,
        "gat3": gat3,
        "pooling": pooled,
        # TODO(synk): dropout is identity in eval mode (training=False); no RNG mask applied.
        "dropout": pooled,
        "final": final,
    }


def init_params(key, in_features, hidden, num_classes):
    """Deterministic synthetic parameter init (shapes match the PyTorch module)."""
    def gat_conv_params(k, f_in, f_out):
        k1, k2, k3 = jax.random.split(k, 3)
        w = jax.random.normal(k1, (f_in, f_out), jnp.float32) * (1.0 / jnp.sqrt(f_in))
        att_src = jax.random.normal(k2, (1, f_out), jnp.float32) * 0.1
        att_dst = jax.random.normal(k3, (1, f_out), jnp.float32) * 0.1
        bias = jnp.zeros((1, f_out), jnp.float32)
        return (w, att_src, att_dst, bias)

    k1, k2, k3, k4 = jax.random.split(key, 4)
    return {
        "conv1": gat_conv_params(k1, in_features, hidden),
        "conv2": gat_conv_params(k2, hidden, hidden),
        "conv3": gat_conv_params(k3, hidden, hidden),
        "lin_w": jax.random.normal(k4, (hidden, num_classes), jnp.float32)
                 * (1.0 / jnp.sqrt(hidden)),
        "lin_b": jnp.zeros((1, num_classes), jnp.float32),
    }


# ---------------------------------------------------------------------------
# Main
# ---------------------------------------------------------------------------
if __name__ == "__main__":
    NUM_NODES = 64          # 2 graphs x 32 nodes
    NUM_GRAPHS = 2
    IN_FEATURES = 8         # dataset.num_node_features
    HIDDEN = 32             # hidden_channels
    NUM_CLASSES = 4         # dataset.num_classes
    EDGES_PER_GRAPH = 128

    key = jax.random.PRNGKey(0)
    k_params, k_x, k_e0s, k_e0d, k_e1s, k_e1d = jax.random.split(key, 6)

    params = init_params(k_params, IN_FEATURES, HIDDEN, NUM_CLASSES)

    x = jax.random.normal(k_x, (NUM_NODES, IN_FEATURES), jnp.float32)

    # Random intra-graph edges (src row 0, dst row 1 — PyG convention).
    half = NUM_NODES // 2
    src0 = jax.random.randint(k_e0s, (EDGES_PER_GRAPH,), 0, half)
    dst0 = jax.random.randint(k_e0d, (EDGES_PER_GRAPH,), 0, half)
    src1 = jax.random.randint(k_e1s, (EDGES_PER_GRAPH,), half, NUM_NODES)
    dst1 = jax.random.randint(k_e1d, (EDGES_PER_GRAPH,), half, NUM_NODES)
    edge_index = jnp.stack(
        [jnp.concatenate([src0, src1]), jnp.concatenate([dst0, dst1])], axis=0
    ).astype(jnp.int32)

    batch = jnp.concatenate(
        [jnp.zeros((half,), jnp.int32), jnp.ones((NUM_NODES - half,), jnp.int32)]
    )

    outputs = gat_forward(params, x, edge_index, batch, NUM_GRAPHS)
    jax.block_until_ready(outputs)

    assert outputs["gat1"].shape == (NUM_NODES, HIDDEN)
    assert outputs["gat2"].shape == (NUM_NODES, HIDDEN)
    assert outputs["gat3"].shape == (NUM_NODES, HIDDEN)
    assert outputs["pooling"].shape == (NUM_GRAPHS, HIDDEN)
    assert outputs["final"].shape == (NUM_GRAPHS, NUM_CLASSES)
    assert bool(jnp.all(jnp.isfinite(outputs["final"])))
    print("KERNEL_OK")
</pallas_src>

<mosaic_0001>
module attributes {stable_mosaic.version = 11 : i64} {
  func.func @fused_gat_kernel(%arg0: memref<64x8xf32, #tpu.memory_space<vmem>>, %arg1: memref<64x64xf32, #tpu.memory_space<vmem>>, %arg2: memref<120x128xf32, #tpu.memory_space<vmem>>, %arg3: memref<208x32xf32, #tpu.memory_space<vmem>>) attributes {dimension_semantics = [], scalar_prefetch = 0 : i64, scratch_operands = 0 : i64, tpu.core_type = #tpu.core_type<tc>} {
    %c0 = arith.constant 0 : index
    %c0_0 = arith.constant 0 : index
    %0 = vector.load %arg1[%c0, %c0_0] : memref<64x64xf32, #tpu.memory_space<vmem>>, vector<64x64xf32>
    %c104 = arith.constant 104 : index
    %c0_1 = arith.constant 0 : index
    %1 = vector.load %arg2[%c104, %c0_1] : memref<120x128xf32, #tpu.memory_space<vmem>>, vector<8x128xf32>
    %c0_2 = arith.constant 0 : index
    %c0_3 = arith.constant 0 : index
    %2 = vector.load %arg0[%c0_2, %c0_3] : memref<64x8xf32, #tpu.memory_space<vmem>>, vector<64x8xf32>
    %c0_4 = arith.constant 0 : index
    %c0_5 = arith.constant 0 : index
    %3 = vector.load %arg2[%c0_4, %c0_5] : memref<120x128xf32, #tpu.memory_space<vmem>>, vector<8x128xf32>
    %4 = vector.extract_strided_slice %3 {offsets = [0, 0], sizes = [8, 34], strides = [1, 1]} : vector<8x128xf32> to vector<8x34xf32>
    %5 = arith.truncf %2 : vector<64x8xf32> to vector<64x8xbf16>
    %6 = arith.truncf %4 : vector<8x34xf32> to vector<8x34xbf16>
    %cst = arith.constant dense<0.000000e+00> : vector<64x34xf32>
    %7 = tpu.matmul %5, %6, %cst {dimension_numbers = #tpu.dot_dimension_numbers<[1], [0], [0], [1], [0, 0, 1, 1], [], []>} : vector<64x8xbf16>, vector<8x34xbf16>, vector<64x34xf32> -> vector<64x34xf32>
    %8 = vector.extract_strided_slice %7 {offsets = [0, 0], sizes = [64, 32], strides = [1, 1]} : vector<64x34xf32> to vector<64x32xf32>
    %9 = vector.extract_strided_slice %7 {offsets = [0, 32], sizes = [64, 1], strides = [1, 1]} : vector<64x34xf32> to vector<64x1xf32>
    %10 = vector.extract_strided_slice %7 {offsets = [0, 33], sizes = [64, 1], strides = [1, 1]} : vector<64x34xf32> to vector<64x1xf32>
    %11 = tpu.transpose %9, [1, 0] : vector<64x1xf32> -> vector<1x64xf32>
    %12 = vector.broadcast %10 : vector<64x1xf32> to vector<64x64xf32>
    %13 = vector.broadcast %11 : vector<1x64xf32> to vector<64x64xf32>
    %14 = arith.addf %12, %13 : vector<64x64xf32>
    %cst_6 = arith.constant 2.000000e-01 : f32
    %15 = vector.broadcast %cst_6 : f32 to vector<64x64xf32>
    %16 = arith.mulf %15, %14 : vector<64x64xf32>
    %17 = arith.maximumf %14, %16 : vector<64x64xf32>
    %18 = arith.addf %17, %0 : vector<64x64xf32>
    %cst_7 = arith.constant dense<0xFF800000> : vector<64xf32>
    %19 = vector.multi_reduction <maximumf>, %18, %cst_7 [1] : vector<64x64xf32> to vector<64xf32>
    %20 = vector.shape_cast %19 : vector<64xf32> to vector<64x1xf32>
    %21 = vector.broadcast %20 : vector<64x1xf32> to vector<64x64xf32>
    %22 = arith.subf %18, %21 : vector<64x64xf32>
    %23 = math.exp %22 : vector<64x64xf32>
    %cst_8 = arith.constant dense<0.000000e+00> : vector<64xf32>
    %24 = vector.multi_reduction <add>, %23, %cst_8 [1] : vector<64x64xf32> to vector<64xf32>
    %25 = vector.shape_cast %24 : vector<64xf32> to vector<64x1xf32>
    %26 = arith.truncf %23 : vector<64x64xf32> to vector<64x64xbf16>
    %27 = arith.truncf %8 : vector<64x32xf32> to vector<64x32xbf16>
    %cst_9 = arith.constant dense<0.000000e+00> : vector<64x32xf32>
    %28 = tpu.matmul %26, %27, %cst_9 {dimension_numbers = #tpu.dot_dimension_numbers<[1], [0], [0], [1], [0, 0, 1, 1], [], []>} : vector<64x64xbf16>, vector<64x32xbf16>, vector<64x32xf32> -> vector<64x32xf32>
    %29 = tpu.reciprocal %25 {approx = true} : vector<64x1xf32> -> vector<64x1xf32>
    %30 = vector.broadcast %29 : vector<64x1xf32> to vector<64x32xf32>
    %31 = arith.mulf %28, %30 : vector<64x32xf32>
    %32 = vector.extract_strided_slice %1 {offsets = [0, 0], sizes = [1, 32], strides = [1, 1]} : vector<8x128xf32> to vector<1x32xf32>
    %33 = vector.broadcast %32 : vector<1x32xf32> to vector<64x32xf32>
    %34 = arith.addf %31, %33 : vector<64x32xf32>
    %cst_10 = arith.constant 0.000000e+00 : f32
    %35 = vector.broadcast %cst_10 : f32 to vector<64x32xf32>
    %36 = arith.maximumf %34, %35 : vector<64x32xf32>
    %c0_11 = arith.constant 0 : index
    %c0_12 = arith.constant 0 : index
    %37 = vector.load %arg3[%c0_11, %c0_12] : memref<208x32xf32, #tpu.memory_space<vmem>>, vector<64x32xf32>
    tpu.vector_store %arg3[%c0_11, %c0_12], %36 {strides = array<i32>} : memref<208x32xf32, #tpu.memory_space<vmem>>, vector<64x32xf32>,
    %c8 = arith.constant 8 : index
    %c0_13 = arith.constant 0 : index
    %38 = vector.load %arg2[%c8, %c0_13] : memref<120x128xf32, #tpu.memory_space<vmem>>, vector<32x128xf32>
    %39 = vector.extract_strided_slice %38 {offsets = [0, 0], sizes = [32, 34], strides = [1, 1]} : vector<32x128xf32> to vector<32x34xf32>
    %40 = arith.truncf %36 : vector<64x32xf32> to vector<64x32xbf16>
    %41 = arith.truncf %39 : vector<32x34xf32> to vector<32x34xbf16>
    %cst_14 = arith.constant dense<0.000000e+00> : vector<64x34xf32>
    %42 = tpu.matmul %40, %41, %cst_14 {dimension_numbers = #tpu.dot_dimension_numbers<[1], [0], [0], [1], [0, 0, 1, 1], [], []>} : vector<64x32xbf16>, vector<32x34xbf16>, vector<64x34xf32> -> vector<64x34xf32>
    %43 = vector.extract_strided_slice %42 {offsets = [0, 0], sizes = [64, 32], strides = [1, 1]} : vector<64x34xf32> to vector<64x32xf32>
    %44 = vector.extract_strided_slice %42 {offsets = [0, 32], sizes = [64, 1], strides = [1, 1]} : vector<64x34xf32> to vector<64x1xf32>
    %45 = vector.extract_strided_slice %42 {offsets = [0, 33], sizes = [64, 1], strides = [1, 1]} : vector<64x34xf32> to vector<64x1xf32>
    %46 = tpu.transpose %44, [1, 0] : vector<64x1xf32> -> vector<1x64xf32>
    %47 = vector.broadcast %45 : vector<64x1xf32> to vector<64x64xf32>
    %48 = vector.broadcast %46 : vector<1x64xf32> to vector<64x64xf32>
    %49 = arith.addf %47, %48 : vector<64x64xf32>
    %cst_15 = arith.constant 2.000000e-01 : f32
    %50 = vector.broadcast %cst_15 : f32 to vector<64x64xf32>
    %51 = arith.mulf %50, %49 : vector<64x64xf32>
    %52 = arith.maximumf %49, %51 : vector<64x64xf32>
    %53 = arith.addf %52, %0 : vector<64x64xf32>
    %cst_16 = arith.constant dense<0xFF800000> : vector<64xf32>
    %54 = vector.multi_reduction <maximumf>, %53, %cst_16 [1] : vector<64x64xf32> to vector<64xf32>
    %55 = vector.shape_cast %54 : vector<64xf32> to vector<64x1xf32>
    %56 = vector.broadcast %55 : vector<64x1xf32> to vector<64x64xf32>
    %57 = arith.subf %53, %56 : vector<64x64xf32>
    %58 = math.exp %57 : vector<64x64xf32>
    %cst_17 = arith.constant dense<0.000000e+00> : vector<64xf32>
    %59 = vector.multi_reduction <add>, %58, %cst_17 [1] : vector<64x64xf32> to vector<64xf32>
    %60 = vector.shape_cast %59 : vector<64xf32> to vector<64x1xf32>
    %61 = arith.truncf %58 : vector<64x64xf32> to vector<64x64xbf16>
    %62 = arith.truncf %43 : vector<64x32xf32> to vector<64x32xbf16>
    %cst_18 = arith.constant dense<0.000000e+00> : vector<64x32xf32>
    %63 = tpu.matmul %61, %62, %cst_18 {dimension_numbers = #tpu.dot_dimension_numbers<[1], [0], [0], [1], [0, 0, 1, 1], [], []>} : vector<64x64xbf16>, vector<64x32xbf16>, vector<64x32xf32> -> vector<64x32xf32>
    %64 = tpu.reciprocal %60 {approx = true} : vector<64x1xf32> -> vector<64x1xf32>
    %65 = vector.broadcast %64 : vector<64x1xf32> to vector<64x32xf32>
    %66 = arith.mulf %63, %65 : vector<64x32xf32>
    %67 = vector.extract_strided_slice %1 {offsets = [1, 0], sizes = [1, 32], strides = [1, 1]} : vector<8x128xf32> to vector<1x32xf32>
    %68 = vector.broadcast %67 : vector<1x32xf32> to vector<64x32xf32>
    %69 = arith.addf %66, %68 : vector<64x32xf32>
    %cst_19 = arith.constant 0.000000e+00 : f32
    %70 = vector.broadcast %cst_19 : f32 to vector<64x32xf32>
    %71 = arith.maximumf %69, %70 : vector<64x32xf32>
    %c64 = arith.constant 64 : index
    %c0_20 = arith.constant 0 : index
    %72 = vector.load %arg3[%c64, %c0_20] : memref<208x32xf32, #tpu.memory_space<vmem>>, vector<64x32xf32>
    tpu.vector_store %arg3[%c64, %c0_20], %71 {strides = array<i32>} : memref<208x32xf32, #tpu.memory_space<vmem>>, vector<64x32xf32>,
    %c40 = arith.constant 40 : index
    %c0_21 = arith.constant 0 : index
    %73 = vector.load %arg2[%c40, %c0_21] : memref<120x128xf32, #tpu.memory_space<vmem>>, vector<32x128xf32>
    %74 = vector.extract_strided_slice %73 {offsets = [0, 0], sizes = [32, 34], strides = [1, 1]} : vector<32x128xf32> to vector<32x34xf32>
    %75 = arith.truncf %71 : vector<64x32xf32> to vector<64x32xbf16>
    %76 = arith.truncf %74 : vector<32x34xf32> to vector<32x34xbf16>
    %cst_22 = arith.constant dense<0.000000e+00> : vector<64x34xf32>
    %77 = tpu.matmul %75, %76, %cst_22 {dimension_numbers = #tpu.dot_dimension_numbers<[1], [0], [0], [1], [0, 0, 1, 1], [], []>} : vector<64x32xbf16>, vector<32x34xbf16>, vector<64x34xf32> -> vector<64x34xf32>
    %78 = vector.extract_strided_slice %77 {offsets = [0, 0], sizes = [64, 32], strides = [1, 1]} : vector<64x34xf32> to vector<64x32xf32>
    %79 = vector.extract_strided_slice %77 {offsets = [0, 32], sizes = [64, 1], strides = [1, 1]} : vector<64x34xf32> to vector<64x1xf32>
    %80 = vector.extract_strided_slice %77 {offsets = [0, 33], sizes = [64, 1], strides = [1, 1]} : vector<64x34xf32> to vector<64x1xf32>
    %81 = tpu.transpose %79, [1, 0] : vector<64x1xf32> -> vector<1x64xf32>
    %82 = vector.broadcast %80 : vector<64x1xf32> to vector<64x64xf32>
    %83 = vector.broadcast %81 : vector<1x64xf32> to vector<64x64xf32>
    %84 = arith.addf %82, %83 : vector<64x64xf32>
    %cst_23 = arith.constant 2.000000e-01 : f32
    %85 = vector.broadcast %cst_23 : f32 to vector<64x64xf32>
    %86 = arith.mulf %85, %84 : vector<64x64xf32>
    %87 = arith.maximumf %84, %86 : vector<64x64xf32>
    %88 = arith.addf %87, %0 : vector<64x64xf32>
    %cst_24 = arith.constant dense<0xFF800000> : vector<64xf32>
    %89 = vector.multi_reduction <maximumf>, %88, %cst_24 [1] : vector<64x64xf32> to vector<64xf32>
    %90 = vector.shape_cast %89 : vector<64xf32> to vector<64x1xf32>
    %91 = vector.broadcast %90 : vector<64x1xf32> to vector<64x64xf32>
    %92 = arith.subf %88, %91 : vector<64x64xf32>
    %93 = math.exp %92 : vector<64x64xf32>
    %cst_25 = arith.constant dense<0.000000e+00> : vector<64xf32>
    %94 = vector.multi_reduction <add>, %93, %cst_25 [1] : vector<64x64xf32> to vector<64xf32>
    %95 = vector.shape_cast %94 : vector<64xf32> to vector<64x1xf32>
    %96 = arith.truncf %93 : vector<64x64xf32> to vector<64x64xbf16>
    %97 = arith.truncf %78 : vector<64x32xf32> to vector<64x32xbf16>
    %cst_26 = arith.constant dense<0.000000e+00> : vector<64x32xf32>
    %98 = tpu.matmul %96, %97, %cst_26 {dimension_numbers = #tpu.dot_dimension_numbers<[1], [0], [0], [1], [0, 0, 1, 1], [], []>} : vector<64x64xbf16>, vector<64x32xbf16>, vector<64x32xf32> -> vector<64x32xf32>
    %99 = tpu.reciprocal %95 {approx = true} : vector<64x1xf32> -> vector<64x1xf32>
    %100 = vector.broadcast %99 : vector<64x1xf32> to vector<64x32xf32>
    %101 = arith.mulf %98, %100 : vector<64x32xf32>
    %102 = vector.extract_strided_slice %1 {offsets = [2, 0], sizes = [1, 32], strides = [1, 1]} : vector<8x128xf32> to vector<1x32xf32>
    %103 = vector.broadcast %102 : vector<1x32xf32> to vector<64x32xf32>
    %104 = arith.addf %101, %103 : vector<64x32xf32>
    %c128 = arith.constant 128 : index
    %c0_27 = arith.constant 0 : index
    %105 = vector.load %arg3[%c128, %c0_27] : memref<208x32xf32, #tpu.memory_space<vmem>>, vector<64x32xf32>
    tpu.vector_store %arg3[%c128, %c0_27], %104 {strides = array<i32>} : memref<208x32xf32, #tpu.memory_space<vmem>>, vector<64x32xf32>,
    %c112 = arith.constant 112 : index
    %c0_28 = arith.constant 0 : index
    %106 = vector.load %arg2[%c112, %c0_28] : memref<120x128xf32, #tpu.memory_space<vmem>>, vector<8x128xf32>
    %107 = vector.extract_strided_slice %106 {offsets = [0, 0], sizes = [8, 64], strides = [1, 1]} : vector<8x128xf32> to vector<8x64xf32>
    %108 = arith.truncf %107 : vector<8x64xf32> to vector<8x64xbf16>
    %109 = arith.truncf %104 : vector<64x32xf32> to vector<64x32xbf16>
    %cst_29 = arith.constant dense<0.000000e+00> : vector<8x32xf32>
    %110 = tpu.matmul %108, %109, %cst_29 {dimension_numbers = #tpu.dot_dimension_numbers<[1], [0], [0], [1], [0, 0, 1, 1], [], []>} : vector<8x64xbf16>, vector<64x32xbf16>, vector<8x32xf32> -> vector<8x32xf32>
    %c192 = arith.constant 192 : index
    %c0_30 = arith.constant 0 : index
    %111 = vector.load %arg3[%c192, %c0_30] : memref<208x32xf32, #tpu.memory_space<vmem>>, vector<8x32xf32>
    tpu.vector_store %arg3[%c192, %c0_30], %110 {strides = array<i32>} : memref<208x32xf32, #tpu.memory_space<vmem>>, vector<8x32xf32>,
    %c72 = arith.constant 72 : index
    %c0_31 = arith.constant 0 : index
    %112 = vector.load %arg2[%c72, %c0_31] : memref<120x128xf32, #tpu.memory_space<vmem>>, vector<32x128xf32>
    %113 = vector.extract_strided_slice %112 {offsets = [0, 0], sizes = [32, 32], strides = [1, 1]} : vector<32x128xf32> to vector<32x32xf32>
    %114 = arith.truncf %110 : vector<8x32xf32> to vector<8x32xbf16>
    %115 = arith.truncf %113 : vector<32x32xf32> to vector<32x32xbf16>
    %cst_32 = arith.constant dense<0.000000e+00> : vector<8x32xf32>
    %116 = tpu.matmul %114, %115, %cst_32 {dimension_numbers = #tpu.dot_dimension_numbers<[1], [0], [0], [1], [0, 0, 1, 1], [], []>} : vector<8x32xbf16>, vector<32x32xbf16>, vector<8x32xf32> -> vector<8x32xf32>
    %117 = vector.extract_strided_slice %1 {offsets = [3, 0], sizes = [1, 32], strides = [1, 1]} : vector<8x128xf32> to vector<1x32xf32>
    %118 = vector.broadcast %117 : vector<1x32xf32> to vector<8x32xf32>
    %119 = arith.addf %116, %118 : vector<8x32xf32>
    %c200 = arith.constant 200 : index
    %c0_33 = arith.constant 0 : index
    %120 = vector.load %arg3[%c200, %c0_33] : memref<208x32xf32, #tpu.memory_space<vmem>>, vector<8x32xf32>
    tpu.vector_store %arg3[%c200, %c0_33], %119 {strides = array<i32>} : memref<208x32xf32, #tpu.memory_space<vmem>>, vector<8x32xf32>,
    return
  }
}

</mosaic_0001>

<bundles_post_ra>
// kernel: tpu_custom_call.1
= control target key start
LH: loop header
LB: loop body
LE: loop exit
PB: predicated region body
PF: predicated region fallthrough
CT: control target
= control target key end

     0   :  { %8 = vsyncpa [#allocation3], 0  ;;  %s1725_s12 = smov [#allocation2]   ;;  %s2091_s0 = inlined_call_operand.vmem [shape: f32[64,8], index: 0, kind: input, shape index: {}]   ;;  %s2092_s1 = inlined_call_operand.vmem [shape: f32[64,64], index: 1, kind: input, shape index: {}]   ;;  %s2093_s2 = inlined_call_operand.hbm [shape: f32[120,128], index: 2, kind: input, shape index: {}]   ;;  %s2094_s3 = inlined_call_operand.vmem [shape: f32[208,32], index: 3, kind: output, shape index: {}]  }
   0x1   :  { %s18_s13 = sshll.u32 %s1725_s12, 4  ;;  %s19_s13 = int_to_ptr.vmem [resolvable:$true] %s18_s13 }
   0x2   :  { %s1711_s14 = scalar_lea.vmem %s19_s13, 1920  ;;  %p1716_p1 = scmp.lt.s32.totalorder %s19_s13, %s19_s13 }
   0x3   :  { %p1712_p0 = scmp.ne.s32.totalorder %s19_s13, %s1711_s14  ;;  %p1717_p2 = scmp.lt.s32.totalorder %s1711_s14, %s1711_s14 }
   0x5   :  { %p1718_p3 = por %p1717_p2, %p1716_p1 }
   0x7   :  { %p1719_p4 = pnand %p1718_p3, %p1712_p0 }
   0x9   :  { %1722 = shalt.err (!%p1719_p4)
}
   0xa   :  { %s1726_s15 = smov 128   ;;  %s1727_s16 = smov 8  }
   0xb   :  { %24 = dma.hbm_to_vmem [thread:$0]  %s2093_s2, 1920, %s19_s13, [#allocation3], %s1726_s15, %s1726_s15, %s1727_s16  }
   0xc   :  { %1723 = dma.done.wait [#allocation3], 1920  }
   0xd   :  { %1724 = vsyncadd [#allocation3], 4294965376  ;;  %v46_v0 = vld [vmem:[#allocation2] sm:$0xff]  ;;  %vm65_vm0 = vcmask 1043456   ;;  %v39_v2 = vld [vmem:[%s2091_s0 + $0x8] sm:$0xff]  ;;  %vm52_vm1 = vcmask 64512   ;;  %v230_v40 = vlaneseq }
   0xe   :  { %v38_v1 = vld [vmem:[%s2091_s0] sm:$0xff]  ;;  %v51_v3 = vpack.c.bf16 %v46_v0, %v46_v0  ;;  %v40_v5 = vld [vmem:[%s2091_s0 + $0x10] sm:$0xff]  ;;  %v41_v6 = vld [vmem:[%s2091_s0 + $0x18] sm:$0xff]  ;;  %v1728_v15 = vmov 33   ;;  %s1729_s7 = smov 96   ;;  %vm266_vm2 = vcmask 523264  }
   0xf   :  { %v47_v4 = vpack.c.bf16 %v39_v2, %v38_v1  ;;  %v42_v7 = vld [vmem:[%s2091_s0 + $0x20] sm:$0xff]  ;;  %v43_v8 = vld [vmem:[%s2091_s0 + $0x28] sm:$0xff]  ;;  %v48_v10 = vpack.c.bf16 %v41_v6, %v40_v5  ;;  %v44_v12 = vld [vmem:[%s2091_s0 + $0x30] sm:$0xff]  ;;  %1597 = vset.pattern.permute.xlu1 %v1728_v15  ;;  %1596 = vset.pattern.permute.xlu0 %v1728_v15  ;;  %v1791_v41 = vshrl.u32 %v230_v40, 7  ;;  %vm460_vm3 = vcmask 261120  }
  0x10   :  { %1588 = vmatprep.subr.msk.bf16.mxu0 %vm65_vm0, %v51_v3  ;;  %v67_v9 = vsel %vm65_vm0, %v51_v3, 0  ;;  %v49_v11 = vpack.c.bf16 %v43_v8, %v42_v7  ;;  %v45_v13 = vld [vmem:[%s2091_s0 + $0x38] sm:$0xff]  ;;  %v1800_v52 = vld [vmem:[%s2092_s1] sm:$0xff]  ;;  %v1805_v57 = vld [vmem:[%s2092_s1 + $0x8] sm:$0xff]  ;;  %vm1731_vm4 = vmmov 0  }
  0x11   :  { %1488 = vmatprep.mubr.msk.bf16.mxu0 %vm52_vm1, %v47_v4  ;;  %1487 = vmatpush3.bf16.msra.mxu0 %v67_v9  ;;  %v50_v14 = vpack.c.bf16 %v45_v13, %v44_v12  ;;  %v1794_v42 = vsub.s32 0, %v1791_v41  ;;  %v1813_v0 = vld [vmem:[%s2092_s1 + $0x10] sm:$0xff]  ;;  %v1820_v7 = vld [vmem:[%s2092_s1 + $0x18] sm:$0xff]  ;;  %v1827_v13 = vld [vmem:[%s2092_s1 + $0x20] sm:$0xff] }
  0x14   :  { %1489 = vmatmul.mubr.msk.bf16.vlgmr.msra.gmra.mxu0 %vm52_vm1, %v48_v10 }
  0x15   :  { %1492 = vmatprep.mubr.msk.bf16.mxu0 %vm52_vm1, %v49_v11 }
  0x1c   :  { %1493 = vmatmul.mubr.msk.bf16.gmra.mxu0 %vm52_vm1, %v50_v14 }
  0xd4   :  { %v1490_v16 = vpop.f32.mrf.mxu0 }
  0xd5   :  { %146 = vrot.lane.b32.xlu1 %v1490_v16, %s1729_s7 }
  0xd6   :  { %v103_v17 = vpop.f32.mrf.mxu0 }
  0xd7   :  { %142 = vrot.lane.b32.xlu0 %v103_v17, %s1729_s7 }
  0xd8   :  { %v1491_v18 = vpop.f32.mrf.mxu0 }
  0xd9   :  { %148 = vrot.lane.b32.xlu1 %v1491_v18, %s1729_s7  ;;  %v344_v26 = vpack.c.bf16 %v1491_v18, %v1490_v16 }
  0xda   :  { %v106_v19 = vpop.f32.mrf.mxu0 }
  0xdb   :  { %144 = vrot.lane.b32.xlu0 %v106_v19, %s1729_s7  ;;  %v343_v27 = vpack.c.bf16 %v106_v19, %v103_v17 }
  0xdc   :  { %v1494_v20 = vpop.f32.mrf.mxu0 }
  0xdd   :  { %203 = vperm.xlu1 %1597, %v106_v19  }
  0xde   :  { %v119_v21 = vpop.f32.mrf.mxu0 }
  0xdf   :  { %150 = vrot.lane.b32.xlu0 %v119_v21, %s1729_s7 }
  0xe0   :  { %v1495_v22 = vpop.f32.mrf.mxu0 }
  0xe1   :  { %207 = vperm.xlu1 %1597, %v1490_v16   ;;  %v346_v23 = vpack.c.bf16 %v1495_v22, %v1494_v20 }
  0xe2   :  { %v122_v24 = vpop.f32.mrf.mxu0 }
  0xe3   :  { %154 = vrot.lane.b32.xlu0 %v1494_v20, %s1729_s7  ;;  %1496 = vmatprep.subr.bf16.mxu1 %v346_v23  ;;  %v345_v25 = vpack.c.bf16 %v122_v24, %v119_v21 }
  0xe4   :  { %1497 = vmatpush3.bf16.msra.mxu1 %v346_v23 }
  0xe5   :  { %223 = vperm.xlu1 %1597, %v1494_v20   ;;  %1498 = vmatprep.subr.bf16.mxu1 %v345_v25  ;;  %v1834_v20 = vld [vmem:[%s2092_s1 + $0x28] sm:$0xff] }
  0xe7   :  { %199 = vperm.xlu0 %1596, %v103_v17  }
  0xe8   :  { %1499 = vmatpush3.bf16.msra.mxu1 %v345_v25  ;;  %v1841_v25 = vld [vmem:[%s2092_s1 + $0x30] sm:$0xff] }
  0xe9   :  { %215 = vperm.xlu1 %1597, %v119_v21   ;;  %1500 = vmatprep.subr.bf16.mxu1 %v344_v26 }
  0xeb   :  { %211 = vperm.xlu0 %1596, %v1491_v18  }
  0xec   :  { %1501 = vmatpush3.bf16.msra.mxu1 %v344_v26 }
  0xed   :  { %156 = vrot.lane.b32.xlu1 %v1495_v22, %s1729_s7  ;;  %1502 = vmatprep.subr.bf16.mxu1 %v343_v27 }
  0xef   :  { %219 = vperm.xlu0 %1596, %v122_v24  }
  0xf0   :  { %1503 = vmatpush3.bf16.msra.mxu1 %v343_v27 }
  0xf1   :  { %152 = vrot.lane.b32.xlu1 %v122_v24, %s1729_s7 }
  0xf3   :  { %227 = vperm.xlu0 %1596, %v1495_v22  }
 0x147   :  { %v147_v30 = vpop.permute.xlu1 %146 }
 0x149   :  { %v143_v28 = vpop.permute.xlu0 %142 }
 0x14a   :  { %166 = vxpose.xlu1.b32.start [1/8] (short) (narrow) %v143_v28, 8 }
 0x14b   :  { %v149_v31 = vpop.permute.xlu1 %148 }
 0x14d   :  { %v145_v29 = vpop.permute.xlu0 %144 }
 0x14e   :  { %167 = vxpose.xlu1.b32.cont [2/8] (short) (narrow) %v145_v29, 8  ;;  %v1848_v29 = vld [vmem:[%s2092_s1 + $0x38] sm:$0xff] }
 0x151   :  { %v151_v33 = vpop.permute.xlu0 %150 }
 0x152   :  { %168 = vxpose.xlu1.b32.cont [3/8] (short) (narrow) %v147_v30, 8 }
 0x155   :  { %v155_v39 = vpop.permute.xlu0 %154 }
 0x156   :  { %169 = vxpose.xlu1.b32.cont [4/8] (short) (narrow) %v149_v31, 8 }
 0x158   :  { %v204_v32 = vpop.permute.xlu1 %203 }
 0x15a   :  { %170 = vxpose.xlu1.b32.cont [5/8] (short) (narrow) %v151_v33, 8 }
 0x15c   :  { %v208_v34 = vpop.permute.xlu1 %207 }
 0x160   :  { %v224_v35 = vpop.permute.xlu1 %223 }
 0x162   :  { %v200_v43 = vpop.permute.xlu0 %199 }
 0x164   :  { %v216_v36 = vpop.permute.xlu1 %215 }
 0x166   :  { %v212_v51 = vpop.permute.xlu0 %211 }
 0x168   :  { %v157_v37 = vpop.permute.xlu1 %156 }
 0x16a   :  { %v220_v1 = vpop.permute.xlu0 %219 }
 0x16c   :  { %v153_v38 = vpop.permute.xlu1 %152 }
 0x16d   :  { %171 = vxpose.xlu1.b32.cont [6/8] (short) (narrow) %v153_v38, 8 }
 0x16e   :  { %v228_v14 = vpop.permute.xlu0 %227 }
 0x171   :  { %172 = vxpose.xlu1.b32.cont [7/8] (short) (narrow) %v155_v39, 8 }
 0x175   :  { %173 = vxpose.xlu1.b32.end [8/8] (short) (narrow) %v157_v37, 8 }
 0x1d5   :  { %v182_v44 = vpop.trf.xlu1 }
 0x1d6   :  { %v233_v45 = vrot.slane %v182_v44, %v1794_v42 }
 0x1d8   :  { %v234_v46 = vadd.f32 %v233_v45, %v200_v43  ;;  %v235_v47 = vadd.f32 %v233_v45, %v204_v32  ;;  %v236_v48 = vadd.f32 %v233_v45, %v208_v34  ;;  %v237_v56 = vadd.f32 %v233_v45, %v212_v51 }
 0x1d9   :  { %v238_v59 = vadd.f32 %v233_v45, %v216_v36  ;;  %v239_v2 = vadd.f32 %v233_v45, %v220_v1  ;;  %v240_v8 = vadd.f32 %v233_v45, %v224_v35  ;;  %v241_v15 = vadd.f32 %v233_v45, %v228_v14 }
 0x1da   :  { %v242_v49 = vmul.f32 0.2, %v234_v46  ;;  %v243_v50 = vmul.f32 0.2, %v235_v47  ;;  %v244_v55 = vmul.f32 0.2, %v236_v48 }
 0x1db   :  { %v245_v63 = vmul.f32 0.2, %v237_v56  ;;  %v246_v6 = vmul.f32 0.2, %v238_v59  ;;  %v247_v12 = vmul.f32 0.2, %v239_v2 }
 0x1dc   :  { %v250_v53 = vmax.f32 %v234_v46, %v242_v49  ;;  %v251_v54 = vmax.f32 %v235_v47, %v243_v50  ;;  %v252_v62 = vmax.f32 %v236_v48, %v244_v55  ;;  %v248_v19 = vmul.f32 0.2, %v240_v8 }
 0x1dd   :  { %v253_v5 = vmax.f32 %v237_v56, %v245_v63  ;;  %v254_v11 = vmax.f32 %v238_v59, %v246_v6  ;;  %v255_v18 = vmax.f32 %v239_v2, %v247_v12  ;;  %v249_v24 = vmul.f32 0.2, %v241_v15 }
 0x1de   :  { %v258_v58 = vadd.f32 %v250_v53, %v1800_v52  ;;  %v259_v61 = vadd.f32 %v251_v54, %v1805_v57  ;;  %v260_v4 = vadd.f32 %v252_v62, %v1813_v0  ;;  %v256_v23 = vmax.f32 %v240_v8, %v248_v19 }
 0x1df   :  { %v261_v10 = vadd.f32 %v253_v5, %v1820_v7  ;;  %v262_v17 = vadd.f32 %v254_v11, %v1827_v13  ;;  %v263_v22 = vadd.f32 %v255_v18, %v1834_v20  ;;  %v257_v28 = vmax.f32 %v241_v15, %v249_v24  ;;  %v469_v24 = vld [vmem:[#allocation2 + $0x8] sm:$0xff] }
 0x1e0   :  { %v267_v60 = vsel %vm266_vm2, %v258_v58, -inf  ;;  %v270_v3 = vsel %vm266_vm2, %v259_v61, -inf  ;;  %v273_v9 = vsel %vm266_vm2, %v260_v4, -inf  ;;  %v264_v27 = vadd.f32 %v256_v23, %v1841_v25 }
 0x1e1   :  { %268 = vmax.xlane.f32.xlu0 %v267_v60  ;;  %v276_v16 = vsel %vm266_vm2, %v261_v10, -inf  ;;  %v279_v21 = vsel %vm266_vm2, %v262_v17, -inf  ;;  %v282_v26 = vsel %vm266_vm2, %v263_v22, -inf  ;;  %v265_v31 = vadd.f32 %v257_v28, %v1848_v29 }
 0x1e2   :  { %v285_v30 = vsel %vm266_vm2, %v264_v27, -inf }
 0x1e3   :  { %v288_v32 = vsel %vm266_vm2, %v265_v31, -inf }
 0x1e5   :  { %271 = vmax.xlane.f32.xlu0 %v270_v3 }
 0x1e9   :  { %274 = vmax.xlane.f32.xlu0 %v273_v9 }
 0x1ed   :  { %277 = vmax.xlane.f32.xlu0 %v276_v16 }
 0x1f1   :  { %280 = vmax.xlane.f32.xlu0 %v279_v21  ;;  %v471_v21 = vld [vmem:[#allocation2 + $0x18] sm:$0xff] }
 0x1f5   :  { %283 = vmax.xlane.f32.xlu0 %v282_v26  ;;  %v470_v26 = vld [vmem:[#allocation2 + $0x10] sm:$0xff] }
 0x1f9   :  { %286 = vmax.xlane.f32.xlu0 %v285_v30 }
 0x1fd   :  { %289 = vmax.xlane.f32.xlu0 %v288_v32 }
 0x26a   :  { %v269_v33 = vpop.xlane.xlu0 %268 }
 0x26b   :  { %v291_v34 = vsub.f32 %v258_v58, %v269_v33 }
 0x26d   :  { %v299_v35 = vmul.f32 1.442695, %v291_v34 }
 0x26e   :  { %v272_v36 = vpop.xlane.xlu0 %271 }
 0x26f   :  { %1598 = vpow2.f32 %v299_v35  ;;  %v292_v37 = vsub.f32 %v259_v61, %v272_v36  ;;  %v1865_v35 = vld [vmem:[#allocation2 + $0x68] sm:$0xff] }
 0x271   :  { %v301_v38 = vmul.f32 1.442695, %v292_v37  ;;  %v443_v37 = vrot.slane %v1865_v35, %v1794_v42 }
 0x272   :  { %v275_v39 = vpop.xlane.xlu0 %274 }
 0x273   :  { %1600 = vpow2.f32 %v301_v38  ;;  %v293_v40 = vsub.f32 %v260_v4, %v275_v39 }
 0x275   :  { %v303_v43 = vmul.f32 1.442695, %v293_v40 }
 0x276   :  { %v278_v44 = vpop.xlane.xlu0 %277 }
 0x277   :  { %1602 = vpow2.f32 %v303_v43  ;;  %v294_v45 = vsub.f32 %v261_v10, %v278_v44 }
 0x279   :  { %v305_v46 = vmul.f32 1.442695, %v294_v45 }
 0x27a   :  { %v281_v47 = vpop.xlane.xlu0 %280 }
 0x27b   :  { %1604 = vpow2.f32 %v305_v46  ;;  %v295_v48 = vsub.f32 %v262_v17, %v281_v47 }
 0x27c   :  { %v1599_v49 = vpop.eup %1598 }
 0x27d   :  { %v307_v50 = vmul.f32 1.442695, %v295_v48  ;;  %v315_v51 = vsel %vm266_vm2, %v1599_v49, 0.0 }
 0x27e   :  { %316 = vadd.xlane.f32.xlu0 %v315_v51  ;;  %v284_v53 = vpop.xlane.xlu0 %283 }
 0x27f   :  { %1606 = vpow2.f32 %v307_v50  ;;  %v296_v54 = vsub.f32 %v263_v22, %v284_v53  ;;  %v472_v22 = vld [vmem:[#allocation2 + $0x20] sm:$0xff] }
 0x280   :  { %v1601_v55 = vpop.eup %1600  ;;  %v478_v23 = vpack.c.bf16 %v472_v22, %v471_v21 }
 0x281   :  { %v309_v56 = vmul.f32 1.442695, %v296_v54  ;;  %v318_v58 = vsel %vm266_vm2, %v1601_v55, 0.0  ;;  %v339_v59 = vpack.c.bf16 %v1601_v55, %v1599_v49 }
 0x282   :  { %319 = vadd.xlane.f32.xlu0 %v318_v58  ;;  %v287_v60 = vpop.xlane.xlu0 %286  ;;  %1512 = vmatprep.subr.bf16.mxu0 %v478_v23 }
 0x283   :  { %1608 = vpow2.f32 %v309_v56  ;;  %v297_v61 = vsub.f32 %v264_v27, %v287_v60  ;;  %1504 = vmatprep.mubr.msk.bf16.mxu1 %vm266_vm2, %v339_v59  ;;  %1513 = vmatpush3.bf16.msra.mxu0 %v478_v23  ;;  %v477_v27 = vpack.c.bf16 %v470_v26, %v469_v24 }
 0x284   :  { %v1603_v62 = vpop.eup %1602 }
 0x285   :  { %v311_v63 = vmul.f32 1.442695, %v297_v61  ;;  %v321_v1 = vsel %vm266_vm2, %v1603_v62, 0.0  ;;  %1514 = vmatprep.subr.bf16.mxu0 %v477_v27 }
 0x286   :  { %322 = vadd.xlane.f32.xlu1 %v321_v1  ;;  %v290_v2 = vpop.xlane.xlu0 %289 }
 0x287   :  { %1610 = vpow2.f32 %v311_v63  ;;  %v298_v3 = vsub.f32 %v265_v31, %v290_v2  ;;  %1515 = vmatpush3.bf16.msra.mxu0 %v477_v27 }
 0x288   :  { %v1605_v4 = vpop.eup %1604 }
 0x289   :  { %v313_v5 = vmul.f32 1.442695, %v298_v3  ;;  %v324_v6 = vsel %vm266_vm2, %v1605_v4, 0.0  ;;  %v340_v8 = vpack.c.bf16 %v1605_v4, %v1603_v62 }
 0x28a   :  { %325 = vadd.xlane.f32.xlu0 %v324_v6 }
 0x28b   :  { %1612 = vpow2.f32 %v313_v5  ;;  %1505 = vmatmul.mubr.msk.bf16.vlgmr.msra.gmra.mxu1 %vm266_vm2, %v340_v8 }
 0x28c   :  { %v1607_v9 = vpop.eup %1606 }
 0x28d   :  { %v327_v10 = vsel %vm266_vm2, %v1607_v9, 0.0 }
 0x28e   :  { %328 = vadd.xlane.f32.xlu0 %v327_v10 }
 0x290   :  { %v1609_v11 = vpop.eup %1608 }
 0x291   :  { %v330_v12 = vsel %vm266_vm2, %v1609_v11, 0.0  ;;  %v341_v14 = vpack.c.bf16 %v1609_v11, %v1607_v9 }
 0x292   :  { %331 = vadd.xlane.f32.xlu0 %v330_v12 }
 0x293   :  { %1508 = vmatprep.mubr.msk.bf16.mxu1 %vm266_vm2, %v341_v14 }
 0x294   :  { %v1611_v15 = vpop.eup %1610 }
 0x295   :  { %v333_v16 = vsel %vm266_vm2, %v1611_v15, 0.0 }
 0x296   :  { %334 = vadd.xlane.f32.xlu0 %v333_v16 }
 0x298   :  { %v1613_v17 = vpop.eup %1612 }
 0x299   :  { %v336_v18 = vsel %vm266_vm2, %v1613_v17, 0.0  ;;  %v342_v19 = vpack.c.bf16 %v1613_v17, %v1611_v15 }
 0x29a   :  { %337 = vadd.xlane.f32.xlu0 %v336_v18 }
 0x29b   :  { %1509 = vmatmul.mubr.msk.bf16.gmra.mxu1 %vm266_vm2, %v342_v19 }
 0x307   :  { %v317_v28 = vpop.xlane.xlu0 %316 }
 0x30b   :  { %v320_v30 = vpop.xlane.xlu0 %319 }
 0x30f   :  { %v323_v32 = vpop.xlane.xlu1 %322 }
 0x310   :  { %1614 = vrcp.f32 %v323_v32 }
 0x311   :  { %1616 = vrcp.f32 %v317_v28 }
 0x313   :  { %v326_v31 = vpop.xlane.xlu0 %325 }
 0x314   :  { %1618 = vrcp.f32 %v326_v31 }
 0x315   :  { %1620 = vrcp.f32 %v320_v30 }
 0x317   :  { %v329_v33 = vpop.xlane.xlu0 %328 }
 0x31b   :  { %v332_v34 = vpop.xlane.xlu0 %331 }
 0x31d   :  { %v1615_v38 = vpop.eup %1614 }
 0x31e   :  { %v1617_v43 = vpop.eup %1616 }
 0x31f   :  { %v335_v36 = vpop.xlane.xlu0 %334 }
 0x320   :  { %1622 = vrcp.f32 %v335_v36 }
 0x321   :  { %v1619_v47 = vpop.eup %1618  ;;  %1624 = vrcp.f32 %v329_v33 }
 0x322   :  { %v1621_v54 = vpop.eup %1620 }
 0x323   :  { %v338_v48 = vpop.xlane.xlu0 %337 }
 0x324   :  { %1626 = vrcp.f32 %v338_v48 }
 0x325   :  { %1628 = vrcp.f32 %v332_v34 }
 0x32d   :  { %v1623_v2 = vpop.eup %1622 }
 0x32e   :  { %v1625_v5 = vpop.eup %1624 }
 0x331   :  { %v1627_v10 = vpop.eup %1626 }
 0x332   :  { %v1629_v16 = vpop.eup %1628 }
 0x34b   :  { %v1506_v39 = vpop.f32.mrf.mxu1 }
 0x34c   :  { %v434_v40 = vmul.f32 %v1615_v38, %v1506_v39 }
 0x34d   :  { %v393_v44 = vpop.f32.mrf.mxu1 }
 0x34e   :  { %v446_v45 = vadd.f32 %v443_v37, %v434_v40  ;;  %v432_v46 = vmul.f32 %v1617_v43, %v393_v44 }
 0x34f   :  { %v1507_v49 = vpop.f32.mrf.mxu1 }
 0x350   :  { %v454_v50 = vmax.f32 %v446_v45, 0.0  ;;  %v444_v51 = vadd.f32 %v443_v37, %v432_v46  ;;  %v435_v53 = vmul.f32 %v1619_v47, %v1507_v49 }
 0x351   :  { %v396_v55 = vpop.f32.mrf.mxu1 }
 0x352   :  { %463 = vst.msk [vmem:[%s2094_s3 + $0x10] sm:$0xff] %vm460_vm3, %v454_v50  ;;  %v452_v56 = vmax.f32 %v444_v51, 0.0  ;;  %v447_v58 = vadd.f32 %v443_v37, %v435_v53  ;;  %v433_v59 = vmul.f32 %v1621_v54, %v396_v55 }
 0x354   :  { %461 = vst.msk [vmem:[%s2094_s3] sm:$0xff] %vm460_vm3, %v452_v56  ;;  %v455_v60 = vmax.f32 %v447_v58, 0.0  ;;  %v445_v61 = vadd.f32 %v443_v37, %v433_v59 }
 0x356   :  { %464 = vst.msk [vmem:[%s2094_s3 + $0x18] sm:$0xff] %vm460_vm3, %v455_v60  ;;  %v453_v62 = vmax.f32 %v445_v61, 0.0  ;;  %v474_v1 = vpack.c.bf16 %v455_v60, %v454_v50 }
 0x358   :  { %462 = vst.msk [vmem:[%s2094_s3 + $0x8] sm:$0xff] %vm460_vm3, %v453_v62  ;;  %v473_v63 = vpack.c.bf16 %v453_v62, %v452_v56 }
 0x35a   :  { %1516 = vmatprep.mubr.msk.bf16.mxu0 %vm460_vm3, %v473_v63 }
 0x35b   :  { %v1510_v3 = vpop.f32.mrf.mxu1  ;;  %1517 = vmatmul.mubr.msk.bf16.vlgmr.msra.gmra.mxu0 %vm460_vm3, %v474_v1 }
 0x35c   :  { %v438_v4 = vmul.f32 %v1623_v2, %v1510_v3 }
 0x35d   :  { %v409_v6 = vpop.f32.mrf.mxu1 }
 0x35e   :  { %v450_v8 = vadd.f32 %v443_v37, %v438_v4  ;;  %v436_v9 = vmul.f32 %v1625_v5, %v409_v6 }
 0x35f   :  { %v1511_v11 = vpop.f32.mrf.mxu1 }
 0x360   :  { %v458_v12 = vmax.f32 %v450_v8, 0.0  ;;  %v448_v14 = vadd.f32 %v443_v37, %v436_v9  ;;  %v439_v15 = vmul.f32 %v1627_v10, %v1511_v11 }
 0x361   :  { %v412_v17 = vpop.f32.mrf.mxu1 }
 0x362   :  { %467 = vst.msk [vmem:[%s2094_s3 + $0x30] sm:$0xff] %vm460_vm3, %v458_v12  ;;  %v456_v18 = vmax.f32 %v448_v14, 0.0  ;;  %v451_v19 = vadd.f32 %v443_v37, %v439_v15  ;;  %v437_v21 = vmul.f32 %v1629_v16, %v412_v17 }
 0x364   :  { %465 = vst.msk [vmem:[%s2094_s3 + $0x20] sm:$0xff] %vm460_vm3, %v456_v18  ;;  %v459_v22 = vmax.f32 %v451_v19, 0.0  ;;  %v449_v23 = vadd.f32 %v443_v37, %v437_v21 }
 0x366   :  { %468 = vst.msk [vmem:[%s2094_s3 + $0x38] sm:$0xff] %vm460_vm3, %v459_v22  ;;  %v457_v24 = vmax.f32 %v449_v23, 0.0  ;;  %v476_v27 = vpack.c.bf16 %v459_v22, %v458_v12 }
 0x368   :  { %466 = vst.msk [vmem:[%s2094_s3 + $0x28] sm:$0xff] %vm460_vm3, %v457_v24  ;;  %v475_v26 = vpack.c.bf16 %v457_v24, %v456_v18 }
 0x36a   :  { %1520 = vmatprep.mubr.msk.bf16.mxu0 %vm460_vm3, %v475_v26 }
 0x36b   :  { %1521 = vmatmul.mubr.msk.bf16.gmra.mxu0 %vm460_vm3, %v476_v27 }
 0x41b   :  { %v1518_v28 = vpop.f32.mrf.mxu0 }
 0x41c   :  { %568 = vrot.lane.b32.xlu0 %v1518_v28, %s1729_s7 }
 0x41d   :  { %v525_v30 = vpop.f32.mrf.mxu0 }
 0x41f   :  { %v1519_v31 = vpop.f32.mrf.mxu0 }
 0x420   :  { %564 = vrot.lane.b32.xlu0 %v525_v30, %s1729_s7  ;;  %v765_v40 = vpack.c.bf16 %v1519_v31, %v1518_v28 }
 0x421   :  { %v528_v32 = vpop.f32.mrf.mxu0 }
 0x422   :  { %566 = vrot.lane.b32.xlu1 %v528_v32, %s1729_s7  ;;  %v764_v43 = vpack.c.bf16 %v528_v32, %v525_v30 }
 0x424   :  { %570 = vrot.lane.b32.xlu0 %v1519_v31, %s1729_s7 }
 0x42b   :  { %v1522_v33 = vpop.f32.mrf.mxu0 }
 0x42c   :  { %576 = vrot.lane.b32.xlu1 %v1522_v33, %s1729_s7 }
 0x42d   :  { %v541_v34 = vpop.f32.mrf.mxu0 }
 0x42e   :  { %572 = vrot.lane.b32.xlu0 %v541_v34, %s1729_s7 }
 0x42f   :  { %v1523_v36 = vpop.f32.mrf.mxu0 }
 0x430   :  { %v767_v37 = vpack.c.bf16 %v1523_v36, %v1522_v33  ;;  %621 = vperm.xlu1 %1597, %v525_v30  }
 0x431   :  { %v544_v38 = vpop.f32.mrf.mxu0 }
 0x432   :  { %v766_v39 = vpack.c.bf16 %v544_v38, %v541_v34  ;;  %1524 = vmatprep.subr.bf16.mxu1 %v767_v37  ;;  %574 = vrot.lane.b32.xlu0 %v544_v38, %s1729_s7 }
 0x433   :  { %1525 = vmatpush3.bf16.msra.mxu1 %v767_v37 }
 0x434   :  { %629 = vperm.xlu1 %1597, %v1518_v28   ;;  %1526 = vmatprep.subr.bf16.mxu1 %v766_v39 }
 0x436   :  { %578 = vrot.lane.b32.xlu0 %v1523_v36, %s1729_s7 }
 0x437   :  { %1527 = vmatpush3.bf16.msra.mxu1 %v766_v39 }
 0x438   :  { %637 = vperm.xlu1 %1597, %v541_v34   ;;  %1528 = vmatprep.subr.bf16.mxu1 %v765_v40 }
 0x43a   :  { %625 = vperm.xlu0 %1596, %v528_v32  }
 0x43b   :  { %1529 = vmatpush3.bf16.msra.mxu1 %v765_v40 }
 0x43c   :  { %645 = vperm.xlu1 %1597, %v1522_v33   ;;  %1530 = vmatprep.subr.bf16.mxu1 %v764_v43 }
 0x43e   :  { %633 = vperm.xlu0 %1596, %v1519_v31  }
 0x43f   :  { %1531 = vmatpush3.bf16.msra.mxu1 %v764_v43 }
 0x442   :  { %641 = vperm.xlu0 %1596, %v544_v38  }
 0x446   :  { %649 = vperm.xlu0 %1596, %v1523_v36  }
 0x48e   :  { %v569_v44 = vpop.permute.xlu0 %568 }
 0x492   :  { %v565_v45 = vpop.permute.xlu0 %564 }
 0x493   :  { %588 = vxpose.xlu1.b32.start [1/8] (short) (narrow) %v565_v45, 8 }
 0x494   :  { %v567_v46 = vpop.permute.xlu1 %566 }
 0x496   :  { %v571_v47 = vpop.permute.xlu0 %570 }
 0x497   :  { %589 = vxpose.xlu1.b32.cont [2/8] (short) (narrow) %v567_v46, 8 }
 0x49b   :  { %590 = vxpose.xlu1.b32.cont [3/8] (short) (narrow) %v569_v44, 8 }
 0x49e   :  { %v577_v50 = vpop.permute.xlu1 %576 }
 0x49f   :  { %591 = vxpose.xlu1.b32.cont [4/8] (short) (narrow) %v571_v47, 8 }
 0x4a0   :  { %v573_v48 = vpop.permute.xlu0 %572 }
 0x4a3   :  { %592 = vxpose.xlu1.b32.cont [5/8] (short) (narrow) %v573_v48, 8 }
 0x4a4   :  { %v575_v49 = vpop.permute.xlu0 %574 }
 0x4a7   :  { %593 = vxpose.xlu1.b32.cont [6/8] (short) (narrow) %v575_v49, 8 }
 0x4a8   :  { %v579_v51 = vpop.permute.xlu0 %578 }
 0x4ab   :  { %594 = vxpose.xlu1.b32.cont [7/8] (short) (narrow) %v577_v50, 8  ;;  %v622_v53 = vpop.permute.xlu1 %621 }
 0x4af   :  { %595 = vxpose.xlu1.b32.end [8/8] (short) (narrow) %v579_v51, 8  ;;  %v630_v54 = vpop.permute.xlu1 %629 }
 0x4b3   :  { %v638_v55 = vpop.permute.xlu1 %637 }
 0x4b5   :  { %v626_v58 = vpop.permute.xlu0 %625 }
 0x4b7   :  { %v646_v56 = vpop.permute.xlu1 %645 }
 0x4b9   :  { %v634_v3 = vpop.permute.xlu0 %633 }
 0x4bd   :  { %v642_v16 = vpop.permute.xlu0 %641 }
 0x50f   :  { %v604_v59 = vpop.trf.xlu1 }
 0x510   :  { %v655_v60 = vrot.slane %v604_v59, %v1794_v42 }
 0x512   :  { %v656_v61 = vadd.f32 %v655_v60, %v622_v53  ;;  %v657_v62 = vadd.f32 %v655_v60, %v626_v58  ;;  %v658_v63 = vadd.f32 %v655_v60, %v630_v54  ;;  %v659_v8 = vadd.f32 %v655_v60, %v634_v3 }
 0x513   :  { %v660_v10 = vadd.f32 %v655_v60, %v638_v55  ;;  %v661_v17 = vadd.f32 %v655_v60, %v642_v16  ;;  %v662_v23 = vadd.f32 %v655_v60, %v646_v56 }
 0x514   :  { %v664_v1 = vmul.f32 0.2, %v656_v61  ;;  %v665_v2 = vmul.f32 0.2, %v657_v62  ;;  %v666_v6 = vmul.f32 0.2, %v658_v63 }
 0x515   :  { %v667_v15 = vmul.f32 0.2, %v659_v8  ;;  %v668_v22 = vmul.f32 0.2, %v660_v10  ;;  %v669_v27 = vmul.f32 0.2, %v661_v17 }
 0x516   :  { %v672_v4 = vmax.f32 %v656_v61, %v664_v1  ;;  %v673_v5 = vmax.f32 %v657_v62, %v665_v2  ;;  %v674_v14 = vmax.f32 %v658_v63, %v666_v6  ;;  %v670_v33 = vmul.f32 0.2, %v662_v23 }
 0x517   :  { %v675_v21 = vmax.f32 %v659_v8, %v667_v15  ;;  %v676_v26 = vmax.f32 %v660_v10, %v668_v22  ;;  %v677_v32 = vmax.f32 %v661_v17, %v669_v27  ;;  %v891_v27 = vld [vmem:[#allocation2 + $0x38] sm:$0xff] }
 0x518   :  { %v680_v9 = vadd.f32 %v672_v4, %v1800_v52  ;;  %v681_v12 = vadd.f32 %v673_v5, %v1805_v57  ;;  %v682_v19 = vadd.f32 %v674_v14, %v1813_v0  ;;  %v650_v57 = vpop.permute.xlu0 %649  ;;  %v678_v36 = vmax.f32 %v662_v23, %v670_v33 }
 0x519   :  { %v683_v24 = vadd.f32 %v675_v21, %v1820_v7  ;;  %v663_v28 = vadd.f32 %v655_v60, %v650_v57  ;;  %v684_v31 = vadd.f32 %v676_v26, %v1827_v13  ;;  %v685_v34 = vadd.f32 %v677_v32, %v1834_v20  ;;  %v892_v57 = vld [vmem:[#allocation2 + $0x40] sm:$0xff] }
 0x51a   :  { %v688_v11 = vsel %vm266_vm2, %v680_v9, -inf  ;;  %v691_v18 = vsel %vm266_vm2, %v681_v12, -inf  ;;  %v694_v52 = vsel %vm266_vm2, %v682_v19, -inf  ;;  %v686_v38 = vadd.f32 %v678_v36, %v1841_v25 }
 0x51b   :  { %689 = vmax.xlane.f32.xlu0 %v688_v11  ;;  %v697_v30 = vsel %vm266_vm2, %v683_v24, -inf  ;;  %v700_v0 = vsel %vm266_vm2, %v684_v31, -inf  ;;  %v671_v37 = vmul.f32 0.2, %v663_v28  ;;  %v703_v7 = vsel %vm266_vm2, %v685_v34, -inf }
 0x51c   :  { %v706_v40 = vsel %vm266_vm2, %v686_v38, -inf }
 0x51d   :  { %v679_v39 = vmax.f32 %v663_v28, %v671_v37  ;;  %v898_v28 = vpack.c.bf16 %v892_v57, %v891_v27 }
 0x51f   :  { %692 = vmax.xlane.f32.xlu0 %v691_v18  ;;  %v687_v13 = vadd.f32 %v679_v39, %v1848_v29  ;;  %1540 = vmatprep.subr.bf16.mxu0 %v898_v28 }
 0x520   :  { %1541 = vmatpush3.bf16.msra.mxu0 %v898_v28 }
 0x521   :  { %v709_v43 = vsel %vm266_vm2, %v687_v13, -inf }
 0x523   :  { %695 = vmax.xlane.f32.xlu0 %v694_v52 }
 0x527   :  { %698 = vmax.xlane.f32.xlu0 %v697_v30  ;;  %v889_v30 = vld [vmem:[#allocation2 + $0x28] sm:$0xff] }
 0x52b   :  { %701 = vmax.xlane.f32.xlu0 %v700_v0 }
 0x52f   :  { %704 = vmax.xlane.f32.xlu0 %v703_v7 }
 0x533   :  { %707 = vmax.xlane.f32.xlu0 %v706_v40 }
 0x537   :  { %710 = vmax.xlane.f32.xlu0 %v709_v43 }
 0x5a4   :  { %v690_v44 = vpop.xlane.xlu0 %689 }
 0x5a5   :  { %v712_v45 = vsub.f32 %v680_v9, %v690_v44 }
 0x5a7   :  { %v720_v20 = vmul.f32 1.442695, %v712_v45 }
 0x5a8   :  { %v693_v46 = vpop.xlane.xlu0 %692 }
 0x5a9   :  { %1630 = vpow2.f32 %v720_v20  ;;  %v713_v47 = vsub.f32 %v681_v12, %v693_v46 }
 0x5ab   :  { %v722_v48 = vmul.f32 1.442695, %v713_v47 }
 0x5ac   :  { %v696_v49 = vpop.xlane.xlu0 %695 }
 0x5ad   :  { %1632 = vpow2.f32 %v722_v48  ;;  %v714_v25 = vsub.f32 %v682_v19, %v696_v49 }
 0x5af   :  { %v724_v50 = vmul.f32 1.442695, %v714_v25 }
 0x5b0   :  { %v699_v51 = vpop.xlane.xlu0 %698 }
 0x5b1   :  { %1634 = vpow2.f32 %v724_v50  ;;  %v715_v53 = vsub.f32 %v683_v24, %v699_v51 }
 0x5b3   :  { %v726_v54 = vmul.f32 1.442695, %v715_v53 }
 0x5b4   :  { %v702_v29 = vpop.xlane.xlu0 %701 }
 0x5b5   :  { %1636 = vpow2.f32 %v726_v54  ;;  %v716_v55 = vsub.f32 %v684_v31, %v702_v29  ;;  %v890_v31 = vld [vmem:[#allocation2 + $0x30] sm:$0xff] }
 0x5b6   :  { %v1631_v56 = vpop.eup %1630  ;;  %v897_v32 = vpack.c.bf16 %v890_v31, %v889_v30 }
 0x5b7   :  { %v728_v58 = vmul.f32 1.442695, %v716_v55  ;;  %v736_v59 = vsel %vm266_vm2, %v1631_v56, 0.0 }
 0x5b8   :  { %737 = vadd.xlane.f32.xlu0 %v736_v59  ;;  %v705_v60 = vpop.xlane.xlu0 %704  ;;  %1542 = vmatprep.subr.bf16.mxu0 %v897_v32 }
 0x5b9   :  { %1638 = vpow2.f32 %v728_v58  ;;  %v717_v61 = vsub.f32 %v685_v34, %v705_v60  ;;  %1543 = vmatpush3.bf16.msra.mxu0 %v897_v32 }
 0x5ba   :  { %v1633_v62 = vpop.eup %1632 }
 0x5bb   :  { %v730_v63 = vmul.f32 1.442695, %v717_v61  ;;  %v739_v1 = vsel %vm266_vm2, %v1633_v62, 0.0  ;;  %v760_v2 = vpack.c.bf16 %v1633_v62, %v1631_v56 }
 0x5bc   :  { %740 = vadd.xlane.f32.xlu0 %v739_v1  ;;  %v708_v3 = vpop.xlane.xlu0 %707 }
 0x5bd   :  { %1640 = vpow2.f32 %v730_v63  ;;  %v718_v4 = vsub.f32 %v686_v38, %v708_v3  ;;  %1532 = vmatprep.mubr.msk.bf16.mxu1 %vm266_vm2, %v760_v2  ;;  %v863_v38 = vsub.s32 1, %v1791_v41 }
 0x5be   :  { %v1635_v5 = vpop.eup %1634 }
 0x5bf   :  { %v732_v6 = vmul.f32 1.442695, %v718_v4  ;;  %v742_v8 = vsel %vm266_vm2, %v1635_v5, 0.0  ;;  %v864_v40 = vrot.slane %v1865_v35, %v863_v38 }
 0x5c0   :  { %743 = vadd.xlane.f32.xlu1 %v742_v8  ;;  %v711_v9 = vpop.xlane.xlu0 %710 }
 0x5c1   :  { %1642 = vpow2.f32 %v732_v6  ;;  %v719_v10 = vsub.f32 %v687_v13, %v711_v9 }
 0x5c2   :  { %v1637_v11 = vpop.eup %1636 }
 0x5c3   :  { %v761_v12 = vpack.c.bf16 %v1637_v11, %v1635_v5  ;;  %v734_v14 = vmul.f32 1.442695, %v719_v10  ;;  %v745_v15 = vsel %vm266_vm2, %v1637_v11, 0.0 }
 0x5c4   :  { %746 = vadd.xlane.f32.xlu0 %v745_v15 }
 0x5c5   :  { %1644 = vpow2.f32 %v734_v14  ;;  %1533 = vmatmul.mubr.msk.bf16.vlgmr.msra.gmra.mxu1 %vm266_vm2, %v761_v12 }
 0x5c6   :  { %v1639_v16 = vpop.eup %1638 }
 0x5c7   :  { %v748_v17 = vsel %vm266_vm2, %v1639_v16, 0.0 }
 0x5c8   :  { %749 = vadd.xlane.f32.xlu0 %v748_v17 }
 0x5ca   :  { %v1641_v18 = vpop.eup %1640 }
 0x5cb   :  { %v751_v19 = vsel %vm266_vm2, %v1641_v18, 0.0  ;;  %v762_v21 = vpack.c.bf16 %v1641_v18, %v1639_v16 }
 0x5cc   :  { %752 = vadd.xlane.f32.xlu0 %v751_v19 }
 0x5cd   :  { %1536 = vmatprep.mubr.msk.bf16.mxu1 %vm266_vm2, %v762_v21 }
 0x5ce   :  { %v1643_v22 = vpop.eup %1642 }
 0x5cf   :  { %v754_v23 = vsel %vm266_vm2, %v1643_v22, 0.0 }
 0x5d0   :  { %755 = vadd.xlane.f32.xlu0 %v754_v23 }
 0x5d2   :  { %v1645_v52 = vpop.eup %1644 }
 0x5d3   :  { %v757_v24 = vsel %vm266_vm2, %v1645_v52, 0.0  ;;  %v763_v26 = vpack.c.bf16 %v1645_v52, %v1643_v22 }
 0x5d4   :  { %758 = vadd.xlane.f32.xlu0 %v757_v24 }
 0x5d5   :  { %1537 = vmatmul.mubr.msk.bf16.gmra.mxu1 %vm266_vm2, %v763_v26 }
 0x641   :  { %v738_v33 = vpop.xlane.xlu0 %737 }
 0x645   :  { %v741_v0 = vpop.xlane.xlu0 %740 }
 0x649   :  { %v744_v36 = vpop.xlane.xlu1 %743 }
 0x64a   :  { %1646 = vrcp.f32 %v744_v36 }
 0x64b   :  { %1648 = vrcp.f32 %v738_v33 }
 0x64d   :  { %v747_v34 = vpop.xlane.xlu0 %746 }
 0x64e   :  { %1650 = vrcp.f32 %v747_v34 }
 0x64f   :  { %1652 = vrcp.f32 %v741_v0 }
 0x651   :  { %v750_v37 = vpop.xlane.xlu0 %749 }
 0x655   :  { %v753_v7 = vpop.xlane.xlu0 %752 }
 0x657   :  { %v1647_v13 = vpop.eup %1646 }
 0x658   :  { %v1649_v45 = vpop.eup %1648 }
 0x659   :  { %v756_v39 = vpop.xlane.xlu0 %755 }
 0x65a   :  { %1654 = vrcp.f32 %v756_v39 }
 0x65b   :  { %v1651_v48 = vpop.eup %1650  ;;  %1656 = vrcp.f32 %v750_v37 }
 0x65c   :  { %v1653_v54 = vpop.eup %1652 }
 0x65d   :  { %v759_v49 = vpop.xlane.xlu0 %758 }
 0x65e   :  { %1658 = vrcp.f32 %v759_v49 }
 0x65f   :  { %1660 = vrcp.f32 %v753_v7 }
 0x667   :  { %v1655_v63 = vpop.eup %1654 }
 0x668   :  { %v1657_v3 = vpop.eup %1656 }
 0x66b   :  { %v1659_v8 = vpop.eup %1658 }
 0x66c   :  { %v1661_v14 = vpop.eup %1660 }
 0x685   :  { %v1534_v43 = vpop.f32.mrf.mxu1 }
 0x686   :  { %v855_v44 = vmul.f32 %v1647_v13, %v1534_v43 }
 0x687   :  { %v814_v20 = vpop.f32.mrf.mxu1 }
 0x688   :  { %v867_v46 = vadd.f32 %v864_v40, %v855_v44  ;;  %v853_v47 = vmul.f32 %v1649_v45, %v814_v20 }
 0x689   :  { %v1535_v25 = vpop.f32.mrf.mxu1 }
 0x68a   :  { %v875_v50 = vmax.f32 %v867_v46, 0.0  ;;  %v865_v51 = vadd.f32 %v864_v40, %v853_v47  ;;  %v856_v53 = vmul.f32 %v1651_v48, %v1535_v25 }
 0x68b   :  { %v817_v29 = vpop.f32.mrf.mxu1 }
 0x68c   :  { %883 = vst.msk [vmem:[%s2094_s3 + $0x50] sm:$0xff] %vm460_vm3, %v875_v50  ;;  %v873_v35 = vmax.f32 %v865_v51, 0.0  ;;  %v868_v55 = vadd.f32 %v864_v40, %v856_v53  ;;  %v854_v56 = vmul.f32 %v1653_v54, %v817_v29 }
 0x68e   :  { %881 = vst.msk [vmem:[%s2094_s3 + $0x40] sm:$0xff] %vm460_vm3, %v873_v35  ;;  %v876_v58 = vmax.f32 %v868_v55, 0.0  ;;  %v866_v59 = vadd.f32 %v864_v40, %v854_v56 }
 0x690   :  { %884 = vst.msk [vmem:[%s2094_s3 + $0x58] sm:$0xff] %vm460_vm3, %v876_v58  ;;  %v874_v60 = vmax.f32 %v866_v59, 0.0  ;;  %v894_v62 = vpack.c.bf16 %v876_v58, %v875_v50 }
 0x692   :  { %882 = vst.msk [vmem:[%s2094_s3 + $0x48] sm:$0xff] %vm460_vm3, %v874_v60  ;;  %v893_v61 = vpack.c.bf16 %v874_v60, %v873_v35  ;;  %v1694_v60 = vld [vmem:[%s2092_s1] sm:$0xff] }
 0x694   :  { %1544 = vmatprep.mubr.msk.bf16.mxu0 %vm460_vm3, %v893_v61 }
 0x695   :  { %v1538_v1 = vpop.f32.mrf.mxu1  ;;  %1545 = vmatmul.mubr.msk.bf16.vlgmr.msra.gmra.mxu0 %vm460_vm3, %v894_v62 }
 0x696   :  { %v859_v2 = vmul.f32 %v1655_v63, %v1538_v1 }
 0x697   :  { %v830_v4 = vpop.f32.mrf.mxu1 }
 0x698   :  { %v871_v5 = vadd.f32 %v864_v40, %v859_v2  ;;  %v857_v6 = vmul.f32 %v1657_v3, %v830_v4 }
 0x699   :  { %v1539_v9 = vpop.f32.mrf.mxu1 }
 0x69a   :  { %v879_v10 = vmax.f32 %v871_v5, 0.0  ;;  %v869_v11 = vadd.f32 %v864_v40, %v857_v6  ;;  %v860_v12 = vmul.f32 %v1659_v8, %v1539_v9  ;;  %v1696_v8 = vld [vmem:[%s2092_s1 + $0x10] sm:$0xff] }
 0x69b   :  { %v833_v15 = vpop.f32.mrf.mxu1 }
 0x69c   :  { %887 = vst.msk [vmem:[%s2094_s3 + $0x70] sm:$0xff] %vm460_vm3, %v879_v10  ;;  %v877_v16 = vmax.f32 %v869_v11, 0.0  ;;  %v872_v17 = vadd.f32 %v864_v40, %v860_v12  ;;  %v858_v18 = vmul.f32 %v1661_v14, %v833_v15  ;;  %v1697_v15 = vld [vmem:[%s2092_s1 + $0x18] sm:$0xff] }
 0x69e   :  { %885 = vst.msk [vmem:[%s2094_s3 + $0x60] sm:$0xff] %vm460_vm3, %v877_v16  ;;  %v880_v19 = vmax.f32 %v872_v17, 0.0  ;;  %v870_v21 = vadd.f32 %v864_v40, %v858_v18 }
 0x6a0   :  { %888 = vst.msk [vmem:[%s2094_s3 + $0x78] sm:$0xff] %vm460_vm3, %v880_v19  ;;  %v878_v22 = vmax.f32 %v870_v21, 0.0  ;;  %v896_v52 = vpack.c.bf16 %v880_v19, %v879_v10 }
 0x6a2   :  { %886 = vst.msk [vmem:[%s2094_s3 + $0x68] sm:$0xff] %vm460_vm3, %v878_v22  ;;  %v895_v23 = vpack.c.bf16 %v878_v22, %v877_v16 }
 0x6a4   :  { %1548 = vmatprep.mubr.msk.bf16.mxu0 %vm460_vm3, %v895_v23  ;;  %v1698_v23 = vld [vmem:[%s2092_s1 + $0x20] sm:$0xff] }
 0x6a5   :  { %1549 = vmatmul.mubr.msk.bf16.gmra.mxu0 %vm460_vm3, %v896_v52 }
 0x755   :  { %v1546_v24 = vpop.f32.mrf.mxu0 }
 0x756   :  { %988 = vrot.lane.b32.xlu0 %v1546_v24, %s1729_s7 }
 0x757   :  { %v945_v26 = vpop.f32.mrf.mxu0 }
 0x759   :  { %v1547_v27 = vpop.f32.mrf.mxu0 }
 0x75a   :  { %984 = vrot.lane.b32.xlu0 %v945_v26, %s1729_s7  ;;  %v1185_v34 = vpack.c.bf16 %v1547_v27, %v1546_v24 }
 0x75b   :  { %v948_v57 = vpop.f32.mrf.mxu0 }
 0x75c   :  { %986 = vrot.lane.b32.xlu1 %v948_v57, %s1729_s7  ;;  %v1184_v36 = vpack.c.bf16 %v948_v57, %v945_v26 }
 0x75e   :  { %990 = vrot.lane.b32.xlu0 %v1547_v27, %s1729_s7 }
 0x765   :  { %v1550_v28 = vpop.f32.mrf.mxu0 }
 0x766   :  { %996 = vrot.lane.b32.xlu1 %v1550_v28, %s1729_s7 }
 0x767   :  { %v961_v30 = vpop.f32.mrf.mxu0 }
 0x768   :  { %992 = vrot.lane.b32.xlu0 %v961_v30, %s1729_s7 }
 0x769   :  { %v1551_v31 = vpop.f32.mrf.mxu0 }
 0x76a   :  { %v1187_v32 = vpack.c.bf16 %v1551_v31, %v1550_v28  ;;  %1041 = vperm.xlu1 %1597, %v945_v26  }
 0x76b   :  { %v964_v33 = vpop.f32.mrf.mxu0 }
 0x76c   :  { %v1186_v0 = vpack.c.bf16 %v964_v33, %v961_v30  ;;  %1552 = vmatprep.subr.bf16.mxu1 %v1187_v32  ;;  %994 = vrot.lane.b32.xlu0 %v964_v33, %s1729_s7 }
 0x76d   :  { %1553 = vmatpush3.bf16.msra.mxu1 %v1187_v32 }
 0x76e   :  { %1049 = vperm.xlu1 %1597, %v1546_v24   ;;  %1554 = vmatprep.subr.bf16.mxu1 %v1186_v0 }
 0x770   :  { %998 = vrot.lane.b32.xlu0 %v1551_v31, %s1729_s7 }
 0x771   :  { %1555 = vmatpush3.bf16.msra.mxu1 %v1186_v0 }
 0x772   :  { %1057 = vperm.xlu1 %1597, %v961_v30   ;;  %1556 = vmatprep.subr.bf16.mxu1 %v1185_v34 }
 0x774   :  { %1045 = vperm.xlu0 %1596, %v948_v57   ;;  %v1699_v57 = vld [vmem:[%s2092_s1 + $0x28] sm:$0xff] }
 0x775   :  { %1557 = vmatpush3.bf16.msra.mxu1 %v1185_v34 }
 0x776   :  { %1065 = vperm.xlu1 %1597, %v1550_v28   ;;  %1558 = vmatprep.subr.bf16.mxu1 %v1184_v36 }
 0x778   :  { %1053 = vperm.xlu0 %1596, %v1547_v27  }
 0x779   :  { %1559 = vmatpush3.bf16.msra.mxu1 %v1184_v36 }
 0x77c   :  { %1061 = vperm.xlu0 %1596, %v964_v33   ;;  %v1700_v33 = vld [vmem:[%s2092_s1 + $0x30] sm:$0xff] }
 0x780   :  { %1069 = vperm.xlu0 %1596, %v1551_v31  }
 0x7c8   :  { %v989_v37 = vpop.permute.xlu0 %988 }
 0x7cc   :  { %v985_v7 = vpop.permute.xlu0 %984 }
 0x7cd   :  { %1008 = vxpose.xlu1.b32.start [1/8] (short) (narrow) %v985_v7, 8 }
 0x7ce   :  { %v987_v38 = vpop.permute.xlu1 %986 }
 0x7d0   :  { %v991_v39 = vpop.permute.xlu0 %990 }
 0x7d1   :  { %1009 = vxpose.xlu1.b32.cont [2/8] (short) (narrow) %v987_v38, 8 }
 0x7d5   :  { %1010 = vxpose.xlu1.b32.cont [3/8] (short) (narrow) %v989_v37, 8  ;;  %v1701_v37 = vld [vmem:[%s2092_s1 + $0x38] sm:$0xff] }
 0x7d8   :  { %v997_v43 = vpop.permute.xlu1 %996 }
 0x7d9   :  { %1011 = vxpose.xlu1.b32.cont [4/8] (short) (narrow) %v991_v39, 8 }
 0x7da   :  { %v993_v40 = vpop.permute.xlu0 %992 }
 0x7dd   :  { %1012 = vxpose.xlu1.b32.cont [5/8] (short) (narrow) %v993_v40, 8 }
 0x7de   :  { %v995_v13 = vpop.permute.xlu0 %994 }
 0x7e1   :  { %1013 = vxpose.xlu1.b32.cont [6/8] (short) (narrow) %v995_v13, 8 }
 0x7e2   :  { %v999_v44 = vpop.permute.xlu0 %998 }
 0x7e5   :  { %1014 = vxpose.xlu1.b32.cont [7/8] (short) (narrow) %v997_v43, 8  ;;  %v1042_v45 = vpop.permute.xlu1 %1041 }
 0x7e9   :  { %1015 = vxpose.xlu1.b32.end [8/8] (short) (narrow) %v999_v44, 8  ;;  %v1050_v20 = vpop.permute.xlu1 %1049 }
 0x7ed   :  { %v1058_v46 = vpop.permute.xlu1 %1057 }
 0x7ef   :  { %v1046_v48 = vpop.permute.xlu0 %1045 }
 0x7f1   :  { %v1066_v47 = vpop.permute.xlu1 %1065 }
 0x7f3   :  { %v1054_v35 = vpop.permute.xlu0 %1053 }
 0x7f7   :  { %v1062_v4 = vpop.permute.xlu0 %1061 }
 0x7fb   :  { %v1070_v19 = vpop.permute.xlu0 %1069 }
 0x849   :  { %v1024_v49 = vpop.trf.xlu1 }
 0x84a   :  { %v1075_v25 = vrot.slane %v1024_v49, %v1794_v42  ;;  %v1695_v42 = vld [vmem:[%s2092_s1 + $0x8] sm:$0xff] }
 0x84c   :  { %v1076_v50 = vadd.f32 %v1075_v25, %v1042_v45  ;;  %v1077_v51 = vadd.f32 %v1075_v25, %v1046_v48  ;;  %v1078_v53 = vadd.f32 %v1075_v25, %v1050_v20  ;;  %v1079_v59 = vadd.f32 %v1075_v25, %v1054_v35 }
 0x84d   :  { %v1080_v62 = vadd.f32 %v1075_v25, %v1058_v46  ;;  %v1081_v5 = vadd.f32 %v1075_v25, %v1062_v4  ;;  %v1082_v12 = vadd.f32 %v1075_v25, %v1066_v47  ;;  %v1083_v21 = vadd.f32 %v1075_v25, %v1070_v19 }
 0x84e   :  { %v1084_v54 = vmul.f32 0.2, %v1076_v50  ;;  %v1085_v29 = vmul.f32 0.2, %v1077_v51  ;;  %v1086_v58 = vmul.f32 0.2, %v1078_v53 }
 0x84f   :  { %v1087_v3 = vmul.f32 0.2, %v1079_v59  ;;  %v1088_v11 = vmul.f32 0.2, %v1080_v62  ;;  %v1089_v18 = vmul.f32 0.2, %v1081_v5 }
 0x850   :  { %v1092_v55 = vmax.f32 %v1076_v50, %v1084_v54  ;;  %v1093_v56 = vmax.f32 %v1077_v51, %v1085_v29  ;;  %v1094_v2 = vmax.f32 %v1078_v53, %v1086_v58  ;;  %v1090_v26 = vmul.f32 0.2, %v1082_v12 }
 0x851   :  { %v1095_v10 = vmax.f32 %v1079_v59, %v1087_v3  ;;  %v1096_v17 = vmax.f32 %v1080_v62, %v1088_v11  ;;  %v1097_v24 = vmax.f32 %v1081_v5, %v1089_v18  ;;  %v1091_v31 = vmul.f32 0.2, %v1083_v21 }
 0x852   :  { %v1100_v61 = vadd.f32 %v1694_v60, %v1092_v55  ;;  %v1101_v1 = vadd.f32 %v1695_v42, %v1093_v56  ;;  %v1102_v9 = vadd.f32 %v1696_v8, %v1094_v2  ;;  %v1098_v30 = vmax.f32 %v1082_v12, %v1090_v26 }
 0x853   :  { %v1103_v16 = vadd.f32 %v1697_v15, %v1095_v10  ;;  %v1104_v52 = vadd.f32 %v1698_v23, %v1096_v17  ;;  %v1105_v28 = vadd.f32 %v1699_v57, %v1097_v24  ;;  %v1099_v34 = vmax.f32 %v1083_v21, %v1091_v31 }
 0x854   :  { %v1108_v63 = vsel %vm266_vm2, %v1100_v61, -inf  ;;  %v1111_v6 = vsel %vm266_vm2, %v1101_v1, -inf  ;;  %v1114_v14 = vsel %vm266_vm2, %v1102_v9, -inf  ;;  %v1106_v0 = vadd.f32 %v1700_v33, %v1098_v30  ;;  %v2037_v30 = vld [vmem:[#allocation2 + $0x68] sm:$0xff] }
 0x855   :  { %1109 = vmax.xlane.f32.xlu0 %v1108_v63  ;;  %v1117_v22 = vsel %vm266_vm2, %v1103_v16, -inf  ;;  %v1120_v27 = vsel %vm266_vm2, %v1104_v52, -inf  ;;  %v1123_v32 = vsel %vm266_vm2, %v1105_v28, -inf  ;;  %v1107_v7 = vadd.f32 %v1701_v37, %v1099_v34 }
 0x856   :  { %v1126_v36 = vsel %vm266_vm2, %v1106_v0, -inf  ;;  %v1730_v21 = vmov 0.0  }
 0x857   :  { %v1129_v38 = vsel %vm266_vm2, %v1107_v7, -inf  ;;  %1568 = vmatprep.subr.bf16.mxu0 %v1730_v21  ;;  %1576 = vmatprep.mubr.msk.bf16.mxu0 %vm1731_vm4, %v1730_v21 }
 0x859   :  { %1112 = vmax.xlane.f32.xlu0 %v1111_v6 }
 0x85d   :  { %1115 = vmax.xlane.f32.xlu0 %v1114_v14 }
 0x861   :  { %1118 = vmax.xlane.f32.xlu0 %v1117_v22 }
 0x865   :  { %1121 = vmax.xlane.f32.xlu0 %v1120_v27 }
 0x869   :  { %1124 = vmax.xlane.f32.xlu0 %v1123_v32 }
 0x86d   :  { %1127 = vmax.xlane.f32.xlu0 %v1126_v36 }
 0x871   :  { %1130 = vmax.xlane.f32.xlu0 %v1129_v38 }
 0x8de   :  { %v1110_v39 = vpop.xlane.xlu0 %1109 }
 0x8df   :  { %v1132_v40 = vsub.f32 %v1100_v61, %v1110_v39 }
 0x8e1   :  { %v1140_v13 = vmul.f32 1.442695, %v1132_v40 }
 0x8e2   :  { %v1113_v43 = vpop.xlane.xlu0 %1112 }
 0x8e3   :  { %v1133_v44 = vsub.f32 %v1101_v1, %v1113_v43  ;;  %1662 = vpow2.f32 %v1140_v13 }
 0x8e5   :  { %v1142_v45 = vmul.f32 1.442695, %v1133_v44 }
 0x8e6   :  { %v1116_v20 = vpop.xlane.xlu0 %1115 }
 0x8e7   :  { %1664 = vpow2.f32 %v1142_v45  ;;  %v1134_v46 = vsub.f32 %v1102_v9, %v1116_v20 }
 0x8e9   :  { %v1144_v47 = vmul.f32 1.442695, %v1134_v46 }
 0x8ea   :  { %v1119_v48 = vpop.xlane.xlu0 %1118 }
 0x8eb   :  { %v1135_v49 = vsub.f32 %v1103_v16, %v1119_v48  ;;  %1666 = vpow2.f32 %v1144_v47 }
 0x8ed   :  { %v1146_v25 = vmul.f32 1.442695, %v1135_v49 }
 0x8ee   :  { %v1122_v50 = vpop.xlane.xlu0 %1121 }
 0x8ef   :  { %1668 = vpow2.f32 %v1146_v25  ;;  %v1136_v51 = vsub.f32 %v1104_v52, %v1122_v50 }
 0x8f0   :  { %v1663_v29 = vpop.eup %1662 }
 0x8f1   :  { %v1148_v53 = vmul.f32 1.442695, %v1136_v51  ;;  %v1156_v18 = vsel %vm266_vm2, %v1663_v29, 0.0 }
 0x8f2   :  { %v1125_v54 = vpop.xlane.xlu0 %1124 }
 0x8f3   :  { %1670 = vpow2.f32 %v1148_v53  ;;  %v1137_v35 = vsub.f32 %v1105_v28, %v1125_v54  ;;  %v1283_v28 = vsub.s32 2, %v1791_v41 }
 0x8f4   :  { %v1665_v55 = vpop.eup %1664 }
 0x8f5   :  { %v1150_v56 = vmul.f32 1.442695, %v1137_v35  ;;  %v1180_v58 = vpack.c.bf16 %v1665_v55, %v1663_v29  ;;  %v1159_v19 = vsel %vm266_vm2, %v1665_v55, 0.0  ;;  %v1284_v31 = vrot.slane %v2037_v30, %v1283_v28 }
 0x8f6   :  { %v1128_v59 = vpop.xlane.xlu0 %1127 }
 0x8f7   :  { %1672 = vpow2.f32 %v1150_v56  ;;  %v1138_v60 = vsub.f32 %v1106_v0, %v1128_v59  ;;  %1560 = vmatprep.mubr.msk.bf16.mxu1 %vm266_vm2, %v1180_v58 }
 0x8f8   :  { %v1667_v63 = vpop.eup %1666 }
 0x8f9   :  { %v1152_v61 = vmul.f32 1.442695, %v1138_v60  ;;  %v1162_v16 = vsel %vm266_vm2, %v1667_v63, 0.0 }
 0x8fa   :  { %v1131_v62 = vpop.xlane.xlu0 %1130 }
 0x8fb   :  { %1674 = vpow2.f32 %v1152_v61  ;;  %v1139_v42 = vsub.f32 %v1107_v7, %v1131_v62 }
 0x8fc   :  { %v1669_v1 = vpop.eup %1668 }
 0x8fd   :  { %v1181_v2 = vpack.c.bf16 %v1669_v1, %v1667_v63  ;;  %v1154_v3 = vmul.f32 1.442695, %v1139_v42  ;;  %v1165_v17 = vsel %vm266_vm2, %v1669_v1, 0.0 }
 0x8ff   :  { %1676 = vpow2.f32 %v1154_v3  ;;  %1561 = vmatmul.mubr.msk.bf16.vlgmr.msra.gmra.mxu1 %vm266_vm2, %v1181_v2  ;;  %v1301_v2 = vld [vmem:[#allocation2 + $0x70] sm:$0xff]  ;;  %v1353_v3 = vld [vmem:[#allocation2 + $0x58] sm:$0xff] }
 0x900   :  { %v1671_v4 = vpop.eup %1670 }
 0x901   :  { %v1168_v5 = vsel %vm266_vm2, %v1671_v4, 0.0 }
 0x902   :  { %1169 = vadd.xlane.f32.xlu1 %v1168_v5 }
 0x904   :  { %v1673_v6 = vpop.eup %1672 }
 0x905   :  { %v1182_v8 = vpack.c.bf16 %v1673_v6, %v1671_v4  ;;  %v1171_v15 = vsel %vm266_vm2, %v1673_v6, 0.0  ;;  %v1354_v4 = vld [vmem:[#allocation2 + $0x60] sm:$0xff]  ;;  %v1302_v6 = vpack.c.bf16 %v1301_v2, %v1301_v2 }
 0x907   :  { %1564 = vmatprep.mubr.msk.bf16.mxu1 %vm266_vm2, %v1182_v8  ;;  %v1357_v8 = vpack.c.bf16 %v1354_v4, %v1353_v3 }
 0x908   :  { %v1675_v9 = vpop.eup %1674 }
 0x909   :  { %v1174_v10 = vsel %vm266_vm2, %v1675_v9, 0.0 }
 0x90a   :  { %1175 = vadd.xlane.f32.xlu0 %v1174_v10  ;;  %v1352_v10 = vld [vmem:[#allocation2 + $0x50] sm:$0xff] }
 0x90c   :  { %v1677_v11 = vpop.eup %1676 }
 0x90d   :  { %v1177_v12 = vsel %vm266_vm2, %v1677_v11, 0.0  ;;  %v1183_v14 = vpack.c.bf16 %v1677_v11, %v1675_v9  ;;  %v1351_v9 = vld [vmem:[#allocation2 + $0x48] sm:$0xff] }
 0x90e   :  { %1178 = vadd.xlane.f32.xlu0 %v1177_v12  ;;  %v1356_v11 = vpack.c.bf16 %v1352_v10, %v1351_v9 }
 0x90f   :  { %1565 = vmatmul.mubr.msk.bf16.gmra.mxu1 %vm266_vm2, %v1183_v14 }
 0x912   :  { %1172 = vadd.xlane.f32.xlu0 %v1171_v15 }
 0x916   :  { %1163 = vadd.xlane.f32.xlu0 %v1162_v16 }
 0x91a   :  { %1166 = vadd.xlane.f32.xlu0 %v1165_v17 }
 0x91e   :  { %1157 = vadd.xlane.f32.xlu0 %v1156_v18  ;;  %v1360_v18 = vsub.s32 3, %v1791_v41 }
 0x922   :  { %1160 = vadd.xlane.f32.xlu0 %v1159_v19  ;;  %v1361_v19 = vrot.slane %v2037_v30, %v1360_v18 }
 0x98b   :  { %v1170_v36 = vpop.xlane.xlu1 %1169 }
 0x993   :  { %v1176_v22 = vpop.xlane.xlu0 %1175 }
 0x997   :  { %v1179_v23 = vpop.xlane.xlu0 %1178 }
 0x99b   :  { %v1173_v52 = vpop.xlane.xlu0 %1172 }
 0x99f   :  { %v1164_v24 = vpop.xlane.xlu0 %1163 }
 0x9a0   :  { %1678 = vrcp.f32 %v1164_v24 }
 0x9a3   :  { %v1167_v26 = vpop.xlane.xlu0 %1166 }
 0x9a7   :  { %v1158_v27 = vpop.xlane.xlu0 %1157 }
 0x9a8   :  { %1680 = vrcp.f32 %v1158_v27 }
 0x9a9   :  { %1682 = vrcp.f32 %v1167_v26 }
 0x9ab   :  { %v1161_v57 = vpop.xlane.xlu0 %1160 }
 0x9ac   :  { %1684 = vrcp.f32 %v1161_v57 }
 0x9ad   :  { %v1679_v32 = vpop.eup %1678  ;;  %1686 = vrcp.f32 %v1176_v22 }
 0x9ae   :  { %1688 = vrcp.f32 %v1170_v36 }
 0x9af   :  { %1690 = vrcp.f32 %v1179_v23 }
 0x9b0   :  { %1692 = vrcp.f32 %v1173_v52 }
 0x9b5   :  { %v1681_v34 = vpop.eup %1680 }
 0x9b6   :  { %v1683_v39 = vpop.eup %1682 }
 0x9b9   :  { %v1685_v44 = vpop.eup %1684 }
 0x9ba   :  { %v1687_v48 = vpop.eup %1686 }
 0x9bb   :  { %v1689_v50 = vpop.eup %1688 }
 0x9bc   :  { %v1691_v29 = vpop.eup %1690 }
 0x9bd   :  { %v1693_v58 = vpop.eup %1692 }
 0x9bf   :  { %v1562_v33 = vpop.f32.mrf.mxu1 }
 0x9c0   :  { %v1275_v0 = vmul.f32 %v1679_v32, %v1562_v33 }
 0x9c1   :  { %v1234_v37 = vpop.f32.mrf.mxu1 }
 0x9c2   :  { %v1287_v7 = vadd.f32 %v1284_v31, %v1275_v0  ;;  %v1273_v38 = vmul.f32 %v1681_v34, %v1234_v37 }
 0x9c3   :  { %v1563_v40 = vpop.f32.mrf.mxu1 }
 0x9c4   :  { %1295 = vst.msk [vmem:[%s2094_s3 + $0x90] sm:$0xff] %vm460_vm3, %v1287_v7  ;;  %v1285_v13 = vadd.f32 %v1284_v31, %v1273_v38  ;;  %v1276_v43 = vmul.f32 %v1683_v39, %v1563_v40 }
 0x9c5   :  { %v1237_v45 = vpop.f32.mrf.mxu1 }
 0x9c6   :  { %1293 = vst.msk [vmem:[%s2094_s3 + $0x80] sm:$0xff] %vm460_vm3, %v1285_v13  ;;  %v1288_v20 = vadd.f32 %v1284_v31, %v1276_v43  ;;  %v1274_v46 = vmul.f32 %v1685_v44, %v1237_v45 }
 0x9c8   :  { %1296 = vst.msk [vmem:[%s2094_s3 + $0x98] sm:$0xff] %vm460_vm3, %v1288_v20  ;;  %v1286_v47 = vadd.f32 %v1284_v31, %v1274_v46  ;;  %v1304_v1 = vpack.c.bf16 %v1288_v20, %v1287_v7 }
 0x9ca   :  { %1294 = vst.msk [vmem:[%s2094_s3 + $0x88] sm:$0xff] %vm460_vm3, %v1286_v47  ;;  %v1303_v5 = vpack.c.bf16 %v1286_v47, %v1285_v13 }
 0x9cf   :  { %v1566_v49 = vpop.f32.mrf.mxu1 }
 0x9d0   :  { %v1279_v25 = vmul.f32 %v1687_v48, %v1566_v49 }
 0x9d1   :  { %v1250_v51 = vpop.f32.mrf.mxu1 }
 0x9d2   :  { %v1291_v53 = vadd.f32 %v1284_v31, %v1279_v25  ;;  %v1277_v54 = vmul.f32 %v1689_v50, %v1250_v51 }
 0x9d3   :  { %v1567_v35 = vpop.f32.mrf.mxu1 }
 0x9d4   :  { %1299 = vst.msk [vmem:[%s2094_s3 + $0xb0] sm:$0xff] %vm460_vm3, %v1291_v53  ;;  %v1289_v55 = vadd.f32 %v1284_v31, %v1277_v54  ;;  %v1280_v56 = vmul.f32 %v1691_v29, %v1567_v35 }
 0x9d5   :  { %v1253_v59 = vpop.f32.mrf.mxu1 }
 0x9d6   :  { %1297 = vst.msk [vmem:[%s2094_s3 + $0xa0] sm:$0xff] %vm460_vm3, %v1289_v55  ;;  %v1292_v60 = vadd.f32 %v1284_v31, %v1280_v56  ;;  %v1278_v61 = vmul.f32 %v1693_v58, %v1253_v59 }
 0x9d8   :  { %1300 = vst.msk [vmem:[%s2094_s3 + $0xb8] sm:$0xff] %vm460_vm3, %v1292_v60  ;;  %v1306_v62 = vpack.c.bf16 %v1292_v60, %v1291_v53  ;;  %v1290_v63 = vadd.f32 %v1284_v31, %v1278_v61 }
 0x9da   :  { %1298 = vst.msk [vmem:[%s2094_s3 + $0xa8] sm:$0xff] %vm460_vm3, %v1290_v63  ;;  %1569 = vmatpush3.bf16.msra.mxu0 %v1306_v62  ;;  %v1305_v42 = vpack.c.bf16 %v1290_v63, %v1289_v55 }
 0x9db   :  { %1570 = vmatprep.subr.bf16.mxu0 %v1730_v21 }
 0x9de   :  { %1571 = vmatpush3.bf16.msra.mxu0 %v1305_v42 }
 0x9df   :  { %1572 = vmatprep.subr.bf16.mxu0 %v1730_v21 }
 0x9e2   :  { %1573 = vmatpush3.bf16.msra.mxu0 %v1304_v1 }
 0x9e3   :  { %1574 = vmatprep.subr.bf16.mxu0 %v1730_v21 }
 0x9e6   :  { %1575 = vmatpush3.bf16.msra.mxu0 %v1303_v5 }
 0x9e7   :  { %1580 = vmatprep.subr.bf16.mxu0 %v1730_v21 }
 0x9e9   :  { %1577 = vmatmul.mubr.msk.bf16.vlgmr.msra.gmra.mxu0 %vm266_vm2, %v1302_v6 }
 0x9ea   :  { %1581 = vmatpush3.bf16.msra.mxu0 %v1357_v8  ;;  %1584 = vmatprep.mubr.msk.bf16.mxu0 %vm1731_vm4, %v1730_v21 }
 0x9eb   :  { %1582 = vmatprep.subr.bf16.mxu0 %v1730_v21 }
 0x9ee   :  { %1583 = vmatpush3.bf16.msra.mxu0 %v1356_v11 }
 0xaa9   :  { %v1344_v12 = vpop.f32.mrf.mxu0 }
 0xaaa   :  { %1350 = vst.msk [vmem:[%s2094_s3 + $0xc0] sm:$0xff] %vm460_vm3, %v1344_v12  ;;  %v1355_v14 = vpack.c.bf16 %v1344_v12, %v1344_v12 }
 0xaab   :  { %v1578_v15 = vpop.f32.mrf.mxu0 }
 0xaac   :  { %1585 = vmatmul.mubr.msk.bf16.vlgmr.msra.gmra.mxu0 %vm460_vm3, %v1355_v14 }
 0xaad   :  { %v1347_v16 = vpop.f32.mrf.mxu0 }
 0xaaf   :  { %v1579_v17 = vpop.f32.mrf.mxu0 }
 0xb6c   :  { %v1399_v21 = vpop.f32.mrf.mxu0 }
 0xb6d   :  { %v1400_v22 = vadd.f32 %v1399_v21, %v1361_v19 }
 0xb6e   :  { %v1586_v23 = vpop.f32.mrf.mxu0 }
 0xb6f   :  { %1405 = vst.msk [vmem:[%s2094_s3 + $0xc8] sm:$0xff] %vm460_vm3, %v1400_v22 }
 0xb70   :  { %v1402_v52 = vpop.f32.mrf.mxu0 }
 0xb72   :  { %v1587_v24 = vpop.f32.mrf.mxu0 }
 0xb73   :  { %1410 = vsyncpa [#allocation3], 1 }

</bundles_post_ra>
